<compile_context>
chip_gen: v5e
topology: v5e:2x2
jax: 0.10.0
libtpu: 0.0.40
codegen_flags: <defaults>
</compile_context>

<pallas_src>
import jax
import jax.numpy as jnp
from jax.experimental import pallas as pl
from jax.experimental.pallas import tpu as pltpu

LANE = 128            # pad all matmul N / channel dims to this many lanes
SUBLANE = 16          # pad all matmul M dims to this (bf16-friendly sublane quantum)
VMEM_LIMIT = 32 * 1024 * 1024


def _round_up(x, m):
    return (x + m - 1) // m * m


# ----------------------------- Pallas kernels -----------------------------

def _conv_relu_pool_kernel(p_ref, w_ref, b_ref, o_ref):
    """Fused conv-as-matmul + bias + ReLU + 2x2 max-pool.

    p_ref: (4, TM, K)  bf16  im2col patches; leading axis = position in the 2x2 window
    w_ref: (K, 128)    bf16  conv weights, Cout zero-padded to 128 lanes
    b_ref: (1, 128)    f32   bias, zero-padded
    o_ref: (TM, 128)   bf16  pooled activations (TM = tile of N*Hout/2*Wout/2 pixels)
    """
    w = w_ref[...]
    p = p_ref[...]
    y0 = jnp.dot(p[0], w, preferred_element_type=jnp.float32)
    y1 = jnp.dot(p[1], w, preferred_element_type=jnp.float32)
    y2 = jnp.dot(p[2], w, preferred_element_type=jnp.float32)
    y3 = jnp.dot(p[3], w, preferred_element_type=jnp.float32)
    # pool over the 4 window positions, then bias + ReLU (bias is shared and ReLU/max
    # are monotone, so this equals relu(conv+bias) followed by max-pool).
    y = jnp.maximum(jnp.maximum(y0, y1), jnp.maximum(y2, y3))
    y = jnp.maximum(y + b_ref[...], 0.0)
    o_ref[...] = y.astype(o_ref.dtype)


def _fc_fused_kernel(x_ref, w1_ref, b1_ref, w2_ref, b2_ref, o_ref):
    """Fused fc1 -> ReLU -> fc2; the (TM, 128) intermediate stays in VMEM/registers."""
    h = jnp.dot(x_ref[...], w1_ref[...], preferred_element_type=jnp.float32)
    h = jnp.maximum(h + b1_ref[...], 0.0)
    y = jnp.dot(h.astype(jnp.bfloat16), w2_ref[...], preferred_element_type=jnp.float32)
    o_ref[...] = (y + b2_ref[...]).astype(o_ref.dtype)


# ------------------------------ wrappers -----------------------------------

def conv_relu_pool(x_nhwc, wmat, bias, *, kh, kw, tm_max=256):
    """Valid conv (PyTorch cross-correlation) + bias + ReLU + 2x2/stride-2 max-pool.

    x_nhwc: (N, H, W, Cin); returns (N, (H-kh+1)//2, (W-kw+1)//2, 128) bf16
    (channels beyond the real Cout are exactly zero and get sliced off by the caller).
    """
    N, H, W, C = x_nhwc.shape
    Ho, Wo = H - kh + 1, W - kw + 1
    Hp, Wp = Ho // 2, Wo // 2
    K = kh * kw * C
    Cpad = wmat.shape[1]

    # TODO(synk): the overlapping-window patch gather has no clean BlockSpec expression
    # (overlapping blocks); it stays as tiny bf16 XLA glue feeding the fused kernel.
    x = x_nhwc.astype(jnp.bfloat16)
    cols = [x[:, i:i + Ho, j:j + Wo, :] for i in range(kh) for j in range(kw)]
    p = jnp.stack(cols, axis=3).reshape(N, Ho, Wo, K)            # (ki, kj, ci) ordering
    p = p.reshape(N, Hp, 2, Wp, 2, K)
    p = jnp.transpose(p, (2, 4, 0, 1, 3, 5)).reshape(4, N * Hp * Wp, K)

    Mp = N * Hp * Wp
    tm = min(tm_max, _round_up(Mp, SUBLANE))
    Mpad = _round_up(Mp, tm)
    if Mpad != Mp:
        p = jnp.pad(p, ((0, 0), (0, Mpad - Mp), (0, 0)))

    flops = 2 * 4 * Mpad * K * Cpad
    bytes_accessed = 4 * Mpad * K * 2 + K * Cpad * 2 + Cpad * 4 + Mpad * Cpad * 2

    out = pl.pallas_call(
        _conv_relu_pool_kernel,
        out_shape=jax.ShapeDtypeStruct((Mpad, Cpad), jnp.bfloat16),
        grid=(Mpad // tm,),
        in_specs=[
            pl.BlockSpec((4, tm, K), lambda i: (0, i, 0)),
            pl.BlockSpec((K, Cpad), lambda i: (0, 0)),
            pl.BlockSpec((1, Cpad), lambda i: (0, 0)),
        ],
        out_specs=pl.BlockSpec((tm, Cpad), lambda i: (i, 0)),
        compiler_params=pltpu.CompilerParams(
            dimension_semantics=("parallel",),
            vmem_limit_bytes=VMEM_LIMIT),
        cost_estimate=pl.CostEstimate(flops=flops, transcendentals=0,
                                      bytes_accessed=bytes_accessed),
    )(p, wmat, bias)
    return out[:Mp].reshape(N, Hp, Wp, Cpad)


def fc_fused(x, w1, b1, w2, b2, *, tm_max=128):
    """y = (relu(x @ w1 + b1)) @ w2 + b2 with lane-padded weights; returns (M, 128) f32."""
    M, K = x.shape
    N1, N2 = w1.shape[1], w2.shape[1]
    tm = min(tm_max, _round_up(M, SUBLANE))
    Mpad = _round_up(M, tm)
    if Mpad != M:
        x = jnp.pad(x, ((0, Mpad - M), (0, 0)))
    x = x.astype(jnp.bfloat16)

    flops = 2 * Mpad * (K * N1 + N1 * N2)
    bytes_accessed = Mpad * K * 2 + K * N1 * 2 + N1 * N2 * 2 + (N1 + N2) * 4 + Mpad * N2 * 4

    out = pl.pallas_call(
        _fc_fused_kernel,
        out_shape=jax.ShapeDtypeStruct((Mpad, N2), jnp.float32),
        grid=(Mpad // tm,),
        in_specs=[
            pl.BlockSpec((tm, K), lambda i: (i, 0)),
            pl.BlockSpec((K, N1), lambda i: (0, 0)),
            pl.BlockSpec((1, N1), lambda i: (0, 0)),
            pl.BlockSpec((N1, N2), lambda i: (0, 0)),
            pl.BlockSpec((1, N2), lambda i: (0, 0)),
        ],
        out_specs=pl.BlockSpec((tm, N2), lambda i: (i, 0)),
        compiler_params=pltpu.CompilerParams(
            dimension_semantics=("parallel",),
            vmem_limit_bytes=VMEM_LIMIT),
        cost_estimate=pl.CostEstimate(flops=flops, transcendentals=0,
                                      bytes_accessed=bytes_accessed),
    )(x, w1, b1, w2, b2)
    return out[:M]


# ------------------------------ parameters ---------------------------------

def init_params(key):
    """PyTorch-layout float32 parameters (nn.Conv2d / nn.Linear layout)."""
    k = jax.random.split(key, 8)
    s = 0.1
    return {
        "conv1_w": jax.random.normal(k[0], (6, 1, 5, 5), jnp.float32) * s,
        "conv1_b": jax.random.normal(k[1], (6,), jnp.float32) * s,
        "conv2_w": jax.random.normal(k[2], (16, 6, 5, 5), jnp.float32) * s,
        "conv2_b": jax.random.normal(k[3], (16,), jnp.float32) * s,
        "fc1_w": jax.random.normal(k[4], (120, 400), jnp.float32) * s,
        "fc1_b": jax.random.normal(k[5], (120,), jnp.float32) * s,
        "fc2_w": jax.random.normal(k[6], (84, 120), jnp.float32) * s,
        "fc2_b": jax.random.normal(k[7], (84,), jnp.float32) * s,
    }


def _prep_conv(w_oihw, b):
    Cout, Cin, kh, kw = w_oihw.shape
    wmat = jnp.transpose(w_oihw, (2, 3, 1, 0)).reshape(kh * kw * Cin, Cout)  # (ki,kj,ci) x co
    wmat = jnp.pad(wmat, ((0, 0), (0, LANE - Cout))).astype(jnp.bfloat16)
    bias = jnp.pad(b, (0, LANE - Cout)).reshape(1, LANE).astype(jnp.float32)
    return wmat, bias


def prepare_params(params):
    """One-time reorg: pad N dims to 128 lanes, pre-transpose FC weights, fold PyTorch's
    (C,H,W) flatten order into fc1's columns, cast MXU operands to bf16."""
    w1c, b1c = _prep_conv(params["conv1_w"], params["conv1_b"])
    w2c, b2c = _prep_conv(params["conv2_w"], params["conv2_b"])

    # fc1: PyTorch flattens (N,16,5,5) in (c,h,w) order; our conv output is (h,w,c).
    f1 = params["fc1_w"].reshape(120, 16, 5, 5)                # (o, c, h, w)
    f1 = jnp.transpose(f1, (2, 3, 1, 0)).reshape(400, 120)     # row = h*80 + w*16 + c
    f1 = jnp.pad(f1, ((0, 0), (0, LANE - 120))).astype(jnp.bfloat16)
    fb1 = jnp.pad(params["fc1_b"], (0, LANE - 120)).reshape(1, LANE).astype(jnp.float32)

    f2 = jnp.pad(params["fc2_w"].T, ((0, LANE - 120), (0, LANE - 84))).astype(jnp.bfloat16)
    fb2 = jnp.pad(params["fc2_b"], (0, LANE - 84)).reshape(1, LANE).astype(jnp.float32)

    return {"conv1_w": w1c, "conv1_b": b1c, "conv2_w": w2c, "conv2_b": b2c,
            "fc1_w": f1, "fc1_b": fb1, "fc2_w": f2, "fc2_b": fb2}


# ------------------------------- forward -----------------------------------

def net_forward(prep, x_nchw):
    """Matches PyTorch Net.forward. x_nchw: (N, 1, 32, 32) -> (N, 84) float32."""
    n = x_nchw.shape[0]
    x = jnp.transpose(x_nchw, (0, 2, 3, 1))                               # NHWC (N,32,32,1)
    h = conv_relu_pool(x, prep["conv1_w"], prep["conv1_b"], kh=5, kw=5)    # (N,14,14,128)
    h = h[..., :6]
    h = conv_relu_pool(h, prep["conv2_w"], prep["conv2_b"], kh=5, kw=5)    # (N,5,5,128)
    h = h[..., :16].reshape(n, 400)                                        # (h,w,c) order
    y = fc_fused(h, prep["fc1_w"], prep["fc1_b"], prep["fc2_w"], prep["fc2_b"])
    return y[:, :84]


def net_forward_ref(params, x_nchw):
    """Pure-JAX f32 reference with PyTorch semantics (sanity check only)."""
    x = x_nchw.astype(jnp.float32)

    def conv(v, w, b):
        y = jax.lax.conv_general_dilated(v, w, (1, 1), "VALID",
                                         dimension_numbers=("NCHW", "OIHW", "NCHW"))
        return y + b[None, :, None, None]

    def pool(v):
        return jax.lax.reduce_window(v, -jnp.inf, jax.lax.max,
                                     (1, 1, 2, 2), (1, 1, 2, 2), "VALID")

    x = pool(jnp.maximum(conv(x, params["conv1_w"], params["conv1_b"]), 0.0))
    x = pool(jnp.maximum(conv(x, params["conv2_w"], params["conv2_b"]), 0.0))
    x = x.reshape(x.shape[0], 400)
    x = jnp.maximum(x @ params["fc1_w"].T + params["fc1_b"], 0.0)
    return x @ params["fc2_w"].T + params["fc2_b"]


if __name__ == "__main__":
    key = jax.random.PRNGKey(0)
    pkey, xkey = jax.random.split(key)
    params = init_params(pkey)
    prep = prepare_params(params)

    # LeNet fc1 expects 16*5*5 features => 32x32 single-channel input.
    x = jax.random.normal(xkey, (2, 1, 32, 32), jnp.float32)

    out = jax.block_until_ready(jax.jit(net_forward)(prep, x))
    assert out.shape == (2, 84) and out.dtype == jnp.float32

    ref = jax.block_until_ready(jax.jit(net_forward_ref)(params, x))
    err = float(jnp.max(jnp.abs(out - ref)))
    assert bool(jnp.isfinite(out).all()) and err < 0.25, f"mismatch vs reference: {err}"
    print("KERNEL_OK")
</pallas_src>

<mosaic_0001>
module attributes {stable_mosaic.version = 11 : i64} {
  func.func @_conv_relu_pool_kernel(%arg0: i32, %arg1: memref<4x256x25xbf16, #tpu.memory_space<vmem>>, %arg2: memref<25x128xbf16, #tpu.memory_space<vmem>>, %arg3: memref<1x128xf32, #tpu.memory_space<vmem>>, %arg4: memref<256x128xbf16, #tpu.memory_space<vmem>>) attributes {dimension_semantics = [#tpu.dimension_semantics<parallel>], iteration_bounds = array<i64: 2>, scalar_prefetch = 0 : i64, scratch_operands = 0 : i64, tpu.core_type = #tpu.core_type<tc>, window_params = [{transform_indices = @transform_0, window_bounds = array<i64: 4, 256, 25>}, {pipeline_mode = #tpu.pipeline_mode<synchronous>, transform_indices = @transform_1, window_bounds = array<i64: 25, 128>}, {pipeline_mode = #tpu.pipeline_mode<synchronous>, transform_indices = @transform_2, window_bounds = array<i64: 1, 128>}, {transform_indices = @transform_3, window_bounds = array<i64: 256, 128>}]} {
    %c0 = arith.constant 0 : index
    %c0_0 = arith.constant 0 : index
    %0 = vector.load %arg2[%c0, %c0_0] : memref<25x128xbf16, #tpu.memory_space<vmem>>, vector<25x128xbf16>
    %c0_1 = arith.constant 0 : index
    %c0_2 = arith.constant 0 : index
    %c0_3 = arith.constant 0 : index
    %1 = vector.load %arg1[%c0_1, %c0_2, %c0_3] : memref<4x256x25xbf16, #tpu.memory_space<vmem>>, vector<4x256x25xbf16>
    %2 = vector.extract_strided_slice %1 {offsets = [0, 0, 0], sizes = [1, 256, 25], strides = [1, 1, 1]} : vector<4x256x25xbf16> to vector<1x256x25xbf16>
    %3 = vector.shape_cast %2 : vector<1x256x25xbf16> to vector<256x25xbf16>
    %cst = arith.constant dense<0.000000e+00> : vector<256x128xf32>
    %4 = tpu.matmul %3, %0, %cst {dimension_numbers = #tpu.dot_dimension_numbers<[1], [0], [0], [1], [0, 0, 1, 1], [], []>} : vector<256x25xbf16>, vector<25x128xbf16>, vector<256x128xf32> -> vector<256x128xf32>
    %5 = vector.extract_strided_slice %1 {offsets = [1, 0, 0], sizes = [1, 256, 25], strides = [1, 1, 1]} : vector<4x256x25xbf16> to vector<1x256x25xbf16>
    %6 = vector.shape_cast %5 : vector<1x256x25xbf16> to vector<256x25xbf16>
    %cst_4 = arith.constant dense<0.000000e+00> : vector<256x128xf32>
    %7 = tpu.matmul %6, %0, %cst_4 {dimension_numbers = #tpu.dot_dimension_numbers<[1], [0], [0], [1], [0, 0, 1, 1], [], []>} : vector<256x25xbf16>, vector<25x128xbf16>, vector<256x128xf32> -> vector<256x128xf32>
    %8 = vector.extract_strided_slice %1 {offsets = [2, 0, 0], sizes = [1, 256, 25], strides = [1, 1, 1]} : vector<4x256x25xbf16> to vector<1x256x25xbf16>
    %9 = vector.shape_cast %8 : vector<1x256x25xbf16> to vector<256x25xbf16>
    %cst_5 = arith.constant dense<0.000000e+00> : vector<256x128xf32>
    %10 = tpu.matmul %9, %0, %cst_5 {dimension_numbers = #tpu.dot_dimension_numbers<[1], [0], [0], [1], [0, 0, 1, 1], [], []>} : vector<256x25xbf16>, vector<25x128xbf16>, vector<256x128xf32> -> vector<256x128xf32>
    %11 = vector.extract_strided_slice %1 {offsets = [3, 0, 0], sizes = [1, 256, 25], strides = [1, 1, 1]} : vector<4x256x25xbf16> to vector<1x256x25xbf16>
    %12 = vector.shape_cast %11 : vector<1x256x25xbf16> to vector<256x25xbf16>
    %cst_6 = arith.constant dense<0.000000e+00> : vector<256x128xf32>
    %13 = tpu.matmul %12, %0, %cst_6 {dimension_numbers = #tpu.dot_dimension_numbers<[1], [0], [0], [1], [0, 0, 1, 1], [], []>} : vector<256x25xbf16>, vector<25x128xbf16>, vector<256x128xf32> -> vector<256x128xf32>
    %14 = arith.maximumf %4, %7 : vector<256x128xf32>
    %15 = arith.maximumf %10, %13 : vector<256x128xf32>
    %16 = arith.maximumf %14, %15 : vector<256x128xf32>
    %c0_7 = arith.constant 0 : index
    %c0_8 = arith.constant 0 : index
    %17 = vector.load %arg3[%c0_7, %c0_8] : memref<1x128xf32, #tpu.memory_space<vmem>>, vector<1x128xf32>
    %18 = vector.broadcast %17 : vector<1x128xf32> to vector<256x128xf32>
    %19 = arith.addf %16, %18 : vector<256x128xf32>
    %cst_9 = arith.constant 0.000000e+00 : f32
    %20 = vector.broadcast %cst_9 : f32 to vector<256x128xf32>
    %21 = arith.maximumf %19, %20 : vector<256x128xf32>
    %22 = arith.truncf %21 : vector<256x128xf32> to vector<256x128xbf16>
    %c0_10 = arith.constant 0 : index
    %c0_11 = arith.constant 0 : index
    %23 = vector.load %arg4[%c0_10, %c0_11] : memref<256x128xbf16, #tpu.memory_space<vmem>>, vector<256x128xbf16>
    tpu.vector_store %arg4[%c0_10, %c0_11], %22 {strides = array<i32>} : memref<256x128xbf16, #tpu.memory_space<vmem>>, vector<256x128xbf16>,
    return
  }
  func.func @transform_0(%arg0: i32) -> (i32, i32, i32) {
    %c0_i32 = arith.constant 0 : i32
    %c0_i32_0 = arith.constant 0 : i32
    %c0_i32_1 = arith.constant 0 : i32
    return %c0_i32, %arg0, %c0_i32_0 : i32, i32, i32
  }
  func.func @transform_1(%arg0: i32) -> (i32, i32) {
    %c0_i32 = arith.constant 0 : i32
    %c0_i32_0 = arith.constant 0 : i32
    %c0_i32_1 = arith.constant 0 : i32
    return %c0_i32, %c0_i32_0 : i32, i32
  }
  func.func @transform_2(%arg0: i32) -> (i32, i32) {
    %c0_i32 = arith.constant 0 : i32
    %c0_i32_0 = arith.constant 0 : i32
    %c0_i32_1 = arith.constant 0 : i32
    return %c0_i32, %c0_i32_0 : i32, i32
  }
  func.func @transform_3(%arg0: i32) -> (i32, i32) {
    %c0_i32 = arith.constant 0 : i32
    %c0_i32_0 = arith.constant 0 : i32
    return %arg0, %c0_i32 : i32, i32
  }
}

module attributes {stable_mosaic.version = 11 : i64} {
  func.func @_conv_relu_pool_kernel(%arg0: i32, %arg1: memref<4x64x150xbf16, #tpu.memory_space<vmem>>, %arg2: memref<150x128xbf16, #tpu.memory_space<vmem>>, %arg3: memref<1x128xf32, #tpu.memory_space<vmem>>, %arg4: memref<64x128xbf16, #tpu.memory_space<vmem>>) attributes {dimension_semantics = [#tpu.dimension_semantics<parallel>], iteration_bounds = array<i64: 1>, scalar_prefetch = 0 : i64, scratch_operands = 0 : i64, tpu.core_type = #tpu.core_type<tc>, window_params = [{transform_indices = @transform_0, window_bounds = array<i64: 4, 64, 150>}, {pipeline_mode = #tpu.pipeline_mode<synchronous>, transform_indices = @transform_1, window_bounds = array<i64: 150, 128>}, {pipeline_mode = #tpu.pipeline_mode<synchronous>, transform_indices = @transform_2, window_bounds = array<i64: 1, 128>}, {transform_indices = @transform_3, window_bounds = array<i64: 64, 128>}]} {
    %c0 = arith.constant 0 : index
    %c0_0 = arith.constant 0 : index
    %0 = vector.load %arg2[%c0, %c0_0] : memref<150x128xbf16, #tpu.memory_space<vmem>>, vector<150x128xbf16>
    %c0_1 = arith.constant 0 : index
    %c0_2 = arith.constant 0 : index
    %c0_3 = arith.constant 0 : index
    %1 = vector.load %arg1[%c0_1, %c0_2, %c0_3] : memref<4x64x150xbf16, #tpu.memory_space<vmem>>, vector<4x64x150xbf16>
    %2 = vector.extract_strided_slice %1 {offsets = [0, 0, 0], sizes = [1, 64, 150], strides = [1, 1, 1]} : vector<4x64x150xbf16> to vector<1x64x150xbf16>
    %3 = vector.shape_cast %2 : vector<1x64x150xbf16> to vector<64x150xbf16>
    %cst = arith.constant dense<0.000000e+00> : vector<64x128xf32>
    %4 = tpu.matmul %3, %0, %cst {dimension_numbers = #tpu.dot_dimension_numbers<[1], [0], [0], [1], [0, 0, 1, 1], [], []>} : vector<64x150xbf16>, vector<150x128xbf16>, vector<64x128xf32> -> vector<64x128xf32>
    %5 = vector.extract_strided_slice %1 {offsets = [1, 0, 0], sizes = [1, 64, 150], strides = [1, 1, 1]} : vector<4x64x150xbf16> to vector<1x64x150xbf16>
    %6 = vector.shape_cast %5 : vector<1x64x150xbf16> to vector<64x150xbf16>
    %cst_4 = arith.constant dense<0.000000e+00> : vector<64x128xf32>
    %7 = tpu.matmul %6, %0, %cst_4 {dimension_numbers = #tpu.dot_dimension_numbers<[1], [0], [0], [1], [0, 0, 1, 1], [], []>} : vector<64x150xbf16>, vector<150x128xbf16>, vector<64x128xf32> -> vector<64x128xf32>
    %8 = vector.extract_strided_slice %1 {offsets = [2, 0, 0], sizes = [1, 64, 150], strides = [1, 1, 1]} : vector<4x64x150xbf16> to vector<1x64x150xbf16>
    %9 = vector.shape_cast %8 : vector<1x64x150xbf16> to vector<64x150xbf16>
    %cst_5 = arith.constant dense<0.000000e+00> : vector<64x128xf32>
    %10 = tpu.matmul %9, %0, %cst_5 {dimension_numbers = #tpu.dot_dimension_numbers<[1], [0], [0], [1], [0, 0, 1, 1], [], []>} : vector<64x150xbf16>, vector<150x128xbf16>, vector<64x128xf32> -> vector<64x128xf32>
    %11 = vector.extract_strided_slice %1 {offsets = [3, 0, 0], sizes = [1, 64, 150], strides = [1, 1, 1]} : vector<4x64x150xbf16> to vector<1x64x150xbf16>
    %12 = vector.shape_cast %11 : vector<1x64x150xbf16> to vector<64x150xbf16>
    %cst_6 = arith.constant dense<0.000000e+00> : vector<64x128xf32>
    %13 = tpu.matmul %12, %0, %cst_6 {dimension_numbers = #tpu.dot_dimension_numbers<[1], [0], [0], [1], [0, 0, 1, 1], [], []>} : vector<64x150xbf16>, vector<150x128xbf16>, vector<64x128xf32> -> vector<64x128xf32>
    %14 = arith.maximumf %4, %7 : vector<64x128xf32>
    %15 = arith.maximumf %10, %13 : vector<64x128xf32>
    %16 = arith.maximumf %14, %15 : vector<64x128xf32>
    %c0_7 = arith.constant 0 : index
    %c0_8 = arith.constant 0 : index
    %17 = vector.load %arg3[%c0_7, %c0_8] : memref<1x128xf32, #tpu.memory_space<vmem>>, vector<1x128xf32>
    %18 = vector.broadcast %17 : vector<1x128xf32> to vector<64x128xf32>
    %19 = arith.addf %16, %18 : vector<64x128xf32>
    %cst_9 = arith.constant 0.000000e+00 : f32
    %20 = vector.broadcast %cst_9 : f32 to vector<64x128xf32>
    %21 = arith.maximumf %19, %20 : vector<64x128xf32>
    %22 = arith.truncf %21 : vector<64x128xf32> to vector<64x128xbf16>
    %c0_10 = arith.constant 0 : index
    %c0_11 = arith.constant 0 : index
    %23 = vector.load %arg4[%c0_10, %c0_11] : memref<64x128xbf16, #tpu.memory_space<vmem>>, vector<64x128xbf16>
    tpu.vector_store %arg4[%c0_10, %c0_11], %22 {strides = array<i32>} : memref<64x128xbf16, #tpu.memory_space<vmem>>, vector<64x128xbf16>,
    return
  }
  func.func @transform_0(%arg0: i32) -> (i32, i32, i32) {
    %c0_i32 = arith.constant 0 : i32
    %c0_i32_0 = arith.constant 0 : i32
    %c0_i32_1 = arith.constant 0 : i32
    return %c0_i32, %arg0, %c0_i32_0 : i32, i32, i32
  }
  func.func @transform_1(%arg0: i32) -> (i32, i32) {
    %c0_i32 = arith.constant 0 : i32
    %c0_i32_0 = arith.constant 0 : i32
    %c0_i32_1 = arith.constant 0 : i32
    return %c0_i32, %c0_i32_0 : i32, i32
  }
  func.func @transform_2(%arg0: i32) -> (i32, i32) {
    %c0_i32 = arith.constant 0 : i32
    %c0_i32_0 = arith.constant 0 : i32
    %c0_i32_1 = arith.constant 0 : i32
    return %c0_i32, %c0_i32_0 : i32, i32
  }
  func.func @transform_3(%arg0: i32) -> (i32, i32) {
    %c0_i32 = arith.constant 0 : i32
    %c0_i32_0 = arith.constant 0 : i32
    return %arg0, %c0_i32 : i32, i32
  }
}

module attributes {stable_mosaic.version = 11 : i64} {
  func.func @_fc_fused_kernel(%arg0: i32, %arg1: memref<16x400xbf16, #tpu.memory_space<vmem>>, %arg2: memref<400x128xbf16, #tpu.memory_space<vmem>>, %arg3: memref<1x128xf32, #tpu.memory_space<vmem>>, %arg4: memref<128x128xbf16, #tpu.memory_space<vmem>>, %arg5: memref<1x128xf32, #tpu.memory_space<vmem>>, %arg6: memref<16x128xf32, #tpu.memory_space<vmem>>) attributes {dimension_semantics = [#tpu.dimension_semantics<parallel>], iteration_bounds = array<i64: 1>, scalar_prefetch = 0 : i64, scratch_operands = 0 : i64, tpu.core_type = #tpu.core_type<tc>, window_params = [{transform_indices = @transform_0, window_bounds = array<i64: 16, 400>}, {pipeline_mode = #tpu.pipeline_mode<synchronous>, transform_indices = @transform_1, window_bounds = array<i64: 400, 128>}, {pipeline_mode = #tpu.pipeline_mode<synchronous>, transform_indices = @transform_2, window_bounds = array<i64: 1, 128>}, {pipeline_mode = #tpu.pipeline_mode<synchronous>, transform_indices = @transform_3, window_bounds = array<i64: 128, 128>}, {pipeline_mode = #tpu.pipeline_mode<synchronous>, transform_indices = @transform_4, window_bounds = array<i64: 1, 128>}, {transform_indices = @transform_5, window_bounds = array<i64: 16, 128>}]} {
    %c0 = arith.constant 0 : index
    %c0_0 = arith.constant 0 : index
    %0 = vector.load %arg1[%c0, %c0_0] : memref<16x400xbf16, #tpu.memory_space<vmem>>, vector<16x400xbf16>
    %c0_1 = arith.constant 0 : index
    %c0_2 = arith.constant 0 : index
    %1 = vector.load %arg2[%c0_1, %c0_2] : memref<400x128xbf16, #tpu.memory_space<vmem>>, vector<400x128xbf16>
    %cst = arith.constant dense<0.000000e+00> : vector<16x128xf32>
    %2 = tpu.matmul %0, %1, %cst {dimension_numbers = #tpu.dot_dimension_numbers<[1], [0], [0], [1], [0, 0, 1, 1], [], []>} : vector<16x400xbf16>, vector<400x128xbf16>, vector<16x128xf32> -> vector<16x128xf32>
    %c0_3 = arith.constant 0 : index
    %c0_4 = arith.constant 0 : index
    %3 = vector.load %arg3[%c0_3, %c0_4] : memref<1x128xf32, #tpu.memory_space<vmem>>, vector<1x128xf32>
    %4 = vector.broadcast %3 : vector<1x128xf32> to vector<16x128xf32>
    %5 = arith.addf %2, %4 : vector<16x128xf32>
    %cst_5 = arith.constant 0.000000e+00 : f32
    %6 = vector.broadcast %cst_5 : f32 to vector<16x128xf32>
    %7 = arith.maximumf %5, %6 : vector<16x128xf32>
    %8 = arith.truncf %7 : vector<16x128xf32> to vector<16x128xbf16>
    %c0_6 = arith.constant 0 : index
    %c0_7 = arith.constant 0 : index
    %9 = vector.load %arg4[%c0_6, %c0_7] : memref<128x128xbf16, #tpu.memory_space<vmem>>, vector<128x128xbf16>
    %cst_8 = arith.constant dense<0.000000e+00> : vector<16x128xf32>
    %10 = tpu.matmul %8, %9, %cst_8 {dimension_numbers = #tpu.dot_dimension_numbers<[1], [0], [0], [1], [0, 0, 1, 1], [], []>} : vector<16x128xbf16>, vector<128x128xbf16>, vector<16x128xf32> -> vector<16x128xf32>
    %c0_9 = arith.constant 0 : index
    %c0_10 = arith.constant 0 : index
    %11 = vector.load %arg5[%c0_9, %c0_10] : memref<1x128xf32, #tpu.memory_space<vmem>>, vector<1x128xf32>
    %12 = vector.broadcast %11 : vector<1x128xf32> to vector<16x128xf32>
    %13 = arith.addf %10, %12 : vector<16x128xf32>
    %c0_11 = arith.constant 0 : index
    %c0_12 = arith.constant 0 : index
    %14 = vector.load %arg6[%c0_11, %c0_12] : memref<16x128xf32, #tpu.memory_space<vmem>>, vector<16x128xf32>
    tpu.vector_store %arg6[%c0_11, %c0_12], %13 {strides = array<i32>} : memref<16x128xf32, #tpu.memory_space<vmem>>, vector<16x128xf32>,
    return
  }
  func.func @transform_0(%arg0: i32) -> (i32, i32) {
    %c0_i32 = arith.constant 0 : i32
    %c0_i32_0 = arith.constant 0 : i32
    return %arg0, %c0_i32 : i32, i32
  }
  func.func @transform_1(%arg0: i32) -> (i32, i32) {
    %c0_i32 = arith.constant 0 : i32
    %c0_i32_0 = arith.constant 0 : i32
    %c0_i32_1 = arith.constant 0 : i32
    return %c0_i32, %c0_i32_0 : i32, i32
  }
  func.func @transform_2(%arg0: i32) -> (i32, i32) {
    %c0_i32 = arith.constant 0 : i32
    %c0_i32_0 = arith.constant 0 : i32
    %c0_i32_1 = arith.constant 0 : i32
    return %c0_i32, %c0_i32_0 : i32, i32
  }
  func.func @transform_3(%arg0: i32) -> (i32, i32) {
    %c0_i32 = arith.constant 0 : i32
    %c0_i32_0 = arith.constant 0 : i32
    %c0_i32_1 = arith.constant 0 : i32
    return %c0_i32, %c0_i32_0 : i32, i32
  }
  func.func @transform_4(%arg0: i32) -> (i32, i32) {
    %c0_i32 = arith.constant 0 : i32
    %c0_i32_0 = arith.constant 0 : i32
    %c0_i32_1 = arith.constant 0 : i32
    return %c0_i32, %c0_i32_0 : i32, i32
  }
  func.func @transform_5(%arg0: i32) -> (i32, i32) {
    %c0_i32 = arith.constant 0 : i32
    %c0_i32_0 = arith.constant 0 : i32
    return %arg0, %c0_i32 : i32, i32
  }
}

</mosaic_0001>

<bundles_post_ra>
// kernel: net_forward.3
= control target key start
LH: loop header
LB: loop body
LE: loop exit
PB: predicated region body
PF: predicated region fallthrough
CT: control target
= control target key end

     0   :  { %s2609_s12 = smov 0   ;;  %s2611_s13 = smov 0   ;;  %s2987_s0 = inlined_call_operand.vmem [shape: bf16[4,512,25], index: 0, kind: input, shape index: {}]   ;;  %s2988_s1 = inlined_call_operand.vmem [shape: bf16[25,128], index: 1, kind: input, shape index: {}]   ;;  %s2989_s2 = inlined_call_operand.vmem [shape: f32[1,128], index: 2, kind: input, shape index: {}]   ;;  %s2990_s3 = inlined_call_operand.vmem [shape: bf16[512,128], index: 3, kind: output, shape index: {}]  }
   0x1   :  { %s2613_s14 = smov 0  }
   0x2 LB: > { %s2035_s15 = sadd.s32 4294967295, %s2586_s14   ;;  %s2626_s16 = sadd.s32 1, %s2586_s14   ;;  %s2586_s14 = sphi %s2613_s14, %s2993_s14   ;;  %s2582_s13 = sphi %s2611_s13, %s2992_s13   ;;  %s2578_s12 = sphi %s2609_s12, %s2991_s12  }
   0x3   : > { %s17_s17 = ssub.s32 %s2586_s14, %s2626_s16  ;;  %s20_s18 = sadd.s32 1, %s2582_s13 }
   0x4   : > { %p18_p0 = scmp.eq.s32.totalorder %s17_s17, 0  ;;  %p27_p1 = scmp.ne.s32.totalorder %s2582_s13, %s2578_s12 }
   0x5   : > { %p28_p2 = scmp.eq.s32.totalorder %s2586_s14, 0  ;;  %p2038_p4 = scmp.ge.s32.totalorder %s2586_s14, 2 }
   0x6   : > { %s2635_s19 = scalar_select %p18_p0, %s2582_s13, %s20_s18  }
   0x7   : > { %p29_p3 = por %p28_p2, %p27_p1  ;;  %127 = sbr.rel (%p2038_p4) target bundleno = 80 (0x50), region = 24 }
   0xc   : > { %130 = sbr.rel (!%p29_p3) target bundleno = 80 (0x50), region = 28  ;;  %s132_s20 = sand.u32 (%p29_p3), 1, %s2582_s13  }
   0xd   : > { %s2376_s21 = sshll.u32 (%p29_p3), %s2586_s14, 7  ;;  %s2039_s22 = sshll.u32 (%p29_p3), %s132_s20, 9 }
   0xe   : > { %s2643_s25 = scalar_lea.vmem (%p29_p3), %s2987_s0, %s2376_s21  ;;  %s2648_s26 = scalar_lea.vmem (%p29_p3), [#allocation2], %s2039_s22 }
   0xf   : > { %v154_v0 = vld [vmem:[%s2643_s25] sm:$0xff] (%p29_p3)   ;;  %v158_v1 = vld [vmem:[%s2643_s25 + $0x8] sm:$0xff] (%p29_p3)   ;;  %v162_v2 = vld [vmem:[%s2643_s25 + $0x10] sm:$0xff] (%p29_p3)  }
  0x10   : > { %155 = vst [vmem:[%s2648_s26] sm:$0xff] (%p29_p3), %v154_v0   ;;  %v166_v3 = vld [vmem:[%s2643_s25 + $0x18] sm:$0xff] (%p29_p3)   ;;  %v170_v4 = vld [vmem:[%s2643_s25 + $0x20] sm:$0xff] (%p29_p3)   ;;  %v174_v5 = vld [vmem:[%s2643_s25 + $0x28] sm:$0xff] (%p29_p3)  }
  0x11   : > { %159 = vst [vmem:[%s2648_s26 + $0x8] sm:$0xff] %v158_v1   ;;  %v178_v6 = vld [vmem:[%s2643_s25 + $0x30] sm:$0xff]   ;;  %v182_v7 = vld [vmem:[%s2643_s25 + $0x38] sm:$0xff]   ;;  %v186_v8 = vld [vmem:[%s2643_s25 + $0x40] sm:$0xff]  }
  0x12   : > { %163 = vst [vmem:[%s2648_s26 + $0x10] sm:$0xff] %v162_v2   ;;  %v190_v9 = vld [vmem:[%s2643_s25 + $0x48] sm:$0xff]   ;;  %v194_v10 = vld [vmem:[%s2643_s25 + $0x50] sm:$0xff]   ;;  %v198_v11 = vld [vmem:[%s2643_s25 + $0x58] sm:$0xff]  }
  0x13   : > { %167 = vst [vmem:[%s2648_s26 + $0x18] sm:$0xff] %v166_v3   ;;  %v202_v12 = vld [vmem:[%s2643_s25 + $0x60] sm:$0xff]   ;;  %v206_v13 = vld [vmem:[%s2643_s25 + $0x68] sm:$0xff]   ;;  %v210_v14 = vld [vmem:[%s2643_s25 + $0x70] sm:$0xff]  }
  0x14   : > { %171 = vst [vmem:[%s2648_s26 + $0x20] sm:$0xff] %v170_v4   ;;  %v214_v15 = vld [vmem:[%s2643_s25 + $0x78] sm:$0xff]   ;;  %v218_v16 = vld [vmem:[%s2643_s25 + $0x100] sm:$0xff]   ;;  %v222_v17 = vld [vmem:[%s2643_s25 + $0x108] sm:$0xff]  }
  0x15   : > { %175 = vst [vmem:[%s2648_s26 + $0x28] sm:$0xff] %v174_v5   ;;  %v226_v18 = vld [vmem:[%s2643_s25 + $0x110] sm:$0xff]   ;;  %v230_v19 = vld [vmem:[%s2643_s25 + $0x118] sm:$0xff]   ;;  %v234_v20 = vld [vmem:[%s2643_s25 + $0x120] sm:$0xff]  }
  0x16   : > { %179 = vst [vmem:[%s2648_s26 + $0x30] sm:$0xff] %v178_v6   ;;  %v238_v21 = vld [vmem:[%s2643_s25 + $0x128] sm:$0xff]   ;;  %v242_v22 = vld [vmem:[%s2643_s25 + $0x130] sm:$0xff]   ;;  %v246_v23 = vld [vmem:[%s2643_s25 + $0x138] sm:$0xff]  }
  0x17   : > { %183 = vst [vmem:[%s2648_s26 + $0x38] sm:$0xff] %v182_v7   ;;  %v250_v24 = vld [vmem:[%s2643_s25 + $0x140] sm:$0xff]   ;;  %v254_v25 = vld [vmem:[%s2643_s25 + $0x148] sm:$0xff]   ;;  %v258_v26 = vld [vmem:[%s2643_s25 + $0x150] sm:$0xff]  }
  0x18   : > { %187 = vst [vmem:[%s2648_s26 + $0x40] sm:$0xff] %v186_v8   ;;  %v262_v27 = vld [vmem:[%s2643_s25 + $0x158] sm:$0xff]   ;;  %v266_v28 = vld [vmem:[%s2643_s25 + $0x160] sm:$0xff]   ;;  %v270_v29 = vld [vmem:[%s2643_s25 + $0x168] sm:$0xff]  }
  0x19   : > { %191 = vst [vmem:[%s2648_s26 + $0x48] sm:$0xff] %v190_v9   ;;  %v274_v30 = vld [vmem:[%s2643_s25 + $0x170] sm:$0xff]   ;;  %v278_v31 = vld [vmem:[%s2643_s25 + $0x178] sm:$0xff]   ;;  %v282_v32 = vld [vmem:[%s2643_s25 + $0x200] sm:$0xff]  }
  0x1a   : > { %195 = vst [vmem:[%s2648_s26 + $0x50] sm:$0xff] %v194_v10   ;;  %v286_v33 = vld [vmem:[%s2643_s25 + $0x208] sm:$0xff]   ;;  %v290_v34 = vld [vmem:[%s2643_s25 + $0x210] sm:$0xff]   ;;  %v294_v35 = vld [vmem:[%s2643_s25 + $0x218] sm:$0xff]  }
  0x1b   : > { %199 = vst [vmem:[%s2648_s26 + $0x58] sm:$0xff] %v198_v11   ;;  %v298_v36 = vld [vmem:[%s2643_s25 + $0x220] sm:$0xff]   ;;  %v302_v37 = vld [vmem:[%s2643_s25 + $0x228] sm:$0xff]   ;;  %v306_v38 = vld [vmem:[%s2643_s25 + $0x230] sm:$0xff]  }
  0x1c   : > { %203 = vst [vmem:[%s2648_s26 + $0x60] sm:$0xff] %v202_v12   ;;  %v310_v39 = vld [vmem:[%s2643_s25 + $0x238] sm:$0xff]   ;;  %v314_v40 = vld [vmem:[%s2643_s25 + $0x240] sm:$0xff]   ;;  %v318_v41 = vld [vmem:[%s2643_s25 + $0x248] sm:$0xff]  }
  0x1d   : > { %207 = vst [vmem:[%s2648_s26 + $0x68] sm:$0xff] %v206_v13   ;;  %v322_v42 = vld [vmem:[%s2643_s25 + $0x250] sm:$0xff]   ;;  %v326_v43 = vld [vmem:[%s2643_s25 + $0x258] sm:$0xff]   ;;  %v330_v44 = vld [vmem:[%s2643_s25 + $0x260] sm:$0xff]  }
  0x1e   : > { %211 = vst [vmem:[%s2648_s26 + $0x70] sm:$0xff] %v210_v14   ;;  %v334_v45 = vld [vmem:[%s2643_s25 + $0x268] sm:$0xff]   ;;  %v338_v46 = vld [vmem:[%s2643_s25 + $0x270] sm:$0xff]   ;;  %v342_v47 = vld [vmem:[%s2643_s25 + $0x278] sm:$0xff]  }
  0x1f   : > { %215 = vst [vmem:[%s2648_s26 + $0x78] sm:$0xff] %v214_v15   ;;  %v346_v48 = vld [vmem:[%s2643_s25 + $0x300] sm:$0xff]   ;;  %v350_v49 = vld [vmem:[%s2643_s25 + $0x308] sm:$0xff]   ;;  %v354_v50 = vld [vmem:[%s2643_s25 + $0x310] sm:$0xff]  }
  0x20   : > { %219 = vst [vmem:[%s2648_s26 + $0x80] sm:$0xff] %v218_v16   ;;  %v358_v51 = vld [vmem:[%s2643_s25 + $0x318] sm:$0xff]   ;;  %v362_v52 = vld [vmem:[%s2643_s25 + $0x320] sm:$0xff]   ;;  %v366_v53 = vld [vmem:[%s2643_s25 + $0x328] sm:$0xff]  }
  0x21   : > { %223 = vst [vmem:[%s2648_s26 + $0x88] sm:$0xff] %v222_v17   ;;  %v370_v54 = vld [vmem:[%s2643_s25 + $0x330] sm:$0xff]   ;;  %v374_v55 = vld [vmem:[%s2643_s25 + $0x338] sm:$0xff]   ;;  %v378_v56 = vld [vmem:[%s2643_s25 + $0x340] sm:$0xff]  }
  0x22   : > { %227 = vst [vmem:[%s2648_s26 + $0x90] sm:$0xff] %v226_v18   ;;  %v382_v57 = vld [vmem:[%s2643_s25 + $0x348] sm:$0xff]   ;;  %v386_v58 = vld [vmem:[%s2643_s25 + $0x350] sm:$0xff]   ;;  %v390_v59 = vld [vmem:[%s2643_s25 + $0x358] sm:$0xff]  }
  0x23   : > { %231 = vst [vmem:[%s2648_s26 + $0x98] sm:$0xff] %v230_v19   ;;  %v394_v60 = vld [vmem:[%s2643_s25 + $0x360] sm:$0xff]   ;;  %v398_v61 = vld [vmem:[%s2643_s25 + $0x368] sm:$0xff]   ;;  %v402_v62 = vld [vmem:[%s2643_s25 + $0x370] sm:$0xff]  }
  0x24   : > { %235 = vst [vmem:[%s2648_s26 + $0xa0] sm:$0xff] %v234_v20   ;;  %v406_v63 = vld [vmem:[%s2643_s25 + $0x378] sm:$0xff]  }
  0x25   : > { %239 = vst [vmem:[%s2648_s26 + $0xa8] sm:$0xff] %v238_v21  }
  0x26   : > { %243 = vst [vmem:[%s2648_s26 + $0xb0] sm:$0xff] %v242_v22  }
  0x27   : > { %247 = vst [vmem:[%s2648_s26 + $0xb8] sm:$0xff] %v246_v23  }
  0x28   : > { %251 = vst [vmem:[%s2648_s26 + $0xc0] sm:$0xff] %v250_v24  }
  0x29   : > { %255 = vst [vmem:[%s2648_s26 + $0xc8] sm:$0xff] %v254_v25  }
  0x2a   : > { %259 = vst [vmem:[%s2648_s26 + $0xd0] sm:$0xff] %v258_v26  }
  0x2b   : > { %263 = vst [vmem:[%s2648_s26 + $0xd8] sm:$0xff] %v262_v27  }
  0x2c   : > { %267 = vst [vmem:[%s2648_s26 + $0xe0] sm:$0xff] %v266_v28  }
  0x2d   : > { %271 = vst [vmem:[%s2648_s26 + $0xe8] sm:$0xff] %v270_v29  }
  0x2e   : > { %275 = vst [vmem:[%s2648_s26 + $0xf0] sm:$0xff] %v274_v30  }
  0x2f   : > { %279 = vst [vmem:[%s2648_s26 + $0xf8] sm:$0xff] %v278_v31  }
  0x30   : > { %283 = vst [vmem:[%s2648_s26 + $0x100] sm:$0xff] %v282_v32  }
  0x31   : > { %287 = vst [vmem:[%s2648_s26 + $0x108] sm:$0xff] %v286_v33  }
  0x32   : > { %291 = vst [vmem:[%s2648_s26 + $0x110] sm:$0xff] %v290_v34  }
  0x33   : > { %295 = vst [vmem:[%s2648_s26 + $0x118] sm:$0xff] %v294_v35  }
  0x34   : > { %299 = vst [vmem:[%s2648_s26 + $0x120] sm:$0xff] %v298_v36  }
  0x35   : > { %303 = vst [vmem:[%s2648_s26 + $0x128] sm:$0xff] %v302_v37  }
  0x36   : > { %307 = vst [vmem:[%s2648_s26 + $0x130] sm:$0xff] %v306_v38  }
  0x37   : > { %311 = vst [vmem:[%s2648_s26 + $0x138] sm:$0xff] %v310_v39  }
  0x38   : > { %315 = vst [vmem:[%s2648_s26 + $0x140] sm:$0xff] %v314_v40  }
  0x39   : > { %319 = vst [vmem:[%s2648_s26 + $0x148] sm:$0xff] %v318_v41  }
  0x3a   : > { %323 = vst [vmem:[%s2648_s26 + $0x150] sm:$0xff] %v322_v42  }
  0x3b   : > { %327 = vst [vmem:[%s2648_s26 + $0x158] sm:$0xff] %v326_v43  }
  0x3c   : > { %331 = vst [vmem:[%s2648_s26 + $0x160] sm:$0xff] %v330_v44  }
  0x3d   : > { %335 = vst [vmem:[%s2648_s26 + $0x168] sm:$0xff] %v334_v45  }
  0x3e   : > { %339 = vst [vmem:[%s2648_s26 + $0x170] sm:$0xff] %v338_v46  }
  0x3f   : > { %343 = vst [vmem:[%s2648_s26 + $0x178] sm:$0xff] %v342_v47  }
  0x40   : > { %347 = vst [vmem:[%s2648_s26 + $0x180] sm:$0xff] %v346_v48  }
  0x41   : > { %351 = vst [vmem:[%s2648_s26 + $0x188] sm:$0xff] %v350_v49  }
  0x42   : > { %355 = vst [vmem:[%s2648_s26 + $0x190] sm:$0xff] %v354_v50  }
  0x43   : > { %359 = vst [vmem:[%s2648_s26 + $0x198] sm:$0xff] %v358_v51  }
  0x44   : > { %363 = vst [vmem:[%s2648_s26 + $0x1a0] sm:$0xff] %v362_v52  }
  0x45   : > { %367 = vst [vmem:[%s2648_s26 + $0x1a8] sm:$0xff] %v366_v53  }
  0x46   : > { %371 = vst [vmem:[%s2648_s26 + $0x1b0] sm:$0xff] %v370_v54  }
  0x47   : > { %375 = vst [vmem:[%s2648_s26 + $0x1b8] sm:$0xff] %v374_v55  }
  0x48   : > { %379 = vst [vmem:[%s2648_s26 + $0x1c0] sm:$0xff] %v378_v56  }
  0x49   : > { %383 = vst [vmem:[%s2648_s26 + $0x1c8] sm:$0xff] %v382_v57  }
  0x4a   : > { %387 = vst [vmem:[%s2648_s26 + $0x1d0] sm:$0xff] %v386_v58  }
  0x4b   : > { %391 = vst [vmem:[%s2648_s26 + $0x1d8] sm:$0xff] %v390_v59  }
  0x4c   : > { %395 = vst [vmem:[%s2648_s26 + $0x1e0] sm:$0xff] %v394_v60  }
  0x4d   : > { %399 = vst [vmem:[%s2648_s26 + $0x1e8] sm:$0xff] %v398_v61  }
  0x4e   : > { %403 = vst [vmem:[%s2648_s26 + $0x1f0] sm:$0xff] %v402_v62  }
  0x4f   : > { %407 = vst [vmem:[%s2648_s26 + $0x1f8] sm:$0xff] %v406_v63  }
  0x50 PF: > { %p2042_p5 = scmp.ge.s32.totalorder %s2586_s14, 1  ;;  %p688_p6 = scmp.lt.s32.totalorder %s2586_s14, 3 }
  0x52   : > { %p689_p7 = pnand %p2042_p5, %p688_p6 }
  0x53   : > { %s695_s4 = sand.u32 (!%p689_p7), 1, %s2578_s12   ;;  %s2044_s9 = sshll.u32 (!%p689_p7), %s2035_s15, 5 }
  0x54   : > { %692 = sbr.rel (%p689_p7) target bundleno = 494 (0x1ee), region = 69  ;;  %s2043_s5 = sshll.u32 (!%p689_p7), %s695_s4, 9 }
  0x55   : > { %s2787_s8 = scalar_lea.vmem (!%p689_p7), [#allocation2], %s2043_s5  ;;  %p720_p8 = scmp.lt.s32.totalorder (!%p689_p7), %s2044_s9, 63 }
  0x59   : > { %v2116_v0 = vld [vmem:[%s2988_s1 + $0x8] sm:$0xf]  ;;  %v2378_v1 = vld [vmem:[%s2988_s1 + $0x8] sm:$0x10]  ;;  %vm998_vm0 = vcmask 1043456   ;;  %vm999_vm1 = vcmask 1044480  }
  0x5a   : > { %v2117_v2 = vor.u32 %v2378_v1, %v2116_v0  ;;  %v2588_v3 = vmov 65535   ;;  %v2377_v7 = vld [vmem:[%s2988_s1] sm:$0xff]  ;;  %vm949_vm2 = vcmask 203776   ;;  %v2380_v12 = vld [vmem:[%s2787_s8 + $0x8] sm:$0xff]  ;;  %v2381_v16 = vld [vmem:[%s2787_s8 + $0x10] sm:$0xff]  ;;  %s2995_s9 = smov (!%p720_p8, %s2044_s9), 63 }
  0x5b   : > { %v1000_v4 = vsel %vm998_vm0, 4294967295, %v2588_v3  ;;  %v2379_v8 = vld [vmem:[%s2787_s8] sm:$0xff]  ;;  %v2396_v13 = vld [vmem:[%s2787_s8 + $0x88] sm:$0xff]  ;;  %v2397_v17 = vld [vmem:[%s2787_s8 + $0x90] sm:$0xff]  ;;  %s2045_s12 = sshll.u32 %s2995_s9, 2 }
  0x5c   : > { %v1001_v5 = vsel %vm999_vm1, %v1000_v4, 0  ;;  %v2395_v9 = vld [vmem:[%s2787_s8 + $0x80] sm:$0xff]  ;;  %v2412_v14 = vld [vmem:[%s2787_s8 + $0x108] sm:$0xff]  ;;  %v2413_v18 = vld [vmem:[%s2787_s8 + $0x110] sm:$0xff]  ;;  %s2881_s17 = scalar_lea.vmem %s2990_s3, %s2045_s12 }
  0x5d   : > { %v1003_v6 = vand.u32 %v2117_v2, %v1001_v5  ;;  %v2411_v10 = vld [vmem:[%s2787_s8 + $0x100] sm:$0xff]  ;;  %v2428_v15 = vld [vmem:[%s2787_s8 + $0x188] sm:$0xff]  ;;  %v2429_v19 = vld [vmem:[%s2787_s8 + $0x190] sm:$0xff] }
  0x5e   : > { %v2427_v11 = vld [vmem:[%s2787_s8 + $0x180] sm:$0xff]  ;;  %v2382_v20 = vld [vmem:[%s2787_s8 + $0x18] sm:$0xff]  ;;  %v2384_v28 = vld [vmem:[%s2787_s8 + $0x28] sm:$0xff] }
  0x5f   : > { %1011 = vmatpush.bf16.msra.mxu0 %v1003_v6  ;;  %1228 = vmatpush.bf16.msra.mxu1 %v1003_v6  ;;  %v2398_v21 = vld [vmem:[%s2787_s8 + $0x98] sm:$0xff]  ;;  %v2383_v24 = vld [vmem:[%s2787_s8 + $0x20] sm:$0xff]  ;;  %v2400_v29 = vld [vmem:[%s2787_s8 + $0xa8] sm:$0xff] }
  0x60   : > { %1445 = vmatpush.bf16.msra.mxu2 %v1003_v6  ;;  %1662 = vmatpush.bf16.msra.mxu3 %v1003_v6  ;;  %v2414_v22 = vld [vmem:[%s2787_s8 + $0x118] sm:$0xff]  ;;  %v2399_v25 = vld [vmem:[%s2787_s8 + $0xa0] sm:$0xff]  ;;  %v2416_v30 = vld [vmem:[%s2787_s8 + $0x128] sm:$0xff] }
  0x61   : > { %v2430_v23 = vld [vmem:[%s2787_s8 + $0x198] sm:$0xff]  ;;  %v2415_v26 = vld [vmem:[%s2787_s8 + $0x120] sm:$0xff]  ;;  %v2432_v31 = vld [vmem:[%s2787_s8 + $0x1a8] sm:$0xff] }
  0x62   : > { %v2431_v27 = vld [vmem:[%s2787_s8 + $0x1a0] sm:$0xff]  ;;  %v2385_v32 = vld [vmem:[%s2787_s8 + $0x30] sm:$0xff]  ;;  %v2386_v36 = vld [vmem:[%s2787_s8 + $0x38] sm:$0xff] }
  0x63   : > { %1012 = vmatpush.bf16.msra.mxu0 %v2377_v7  ;;  %1229 = vmatpush.bf16.msra.mxu1 %v2377_v7  ;;  %v2401_v33 = vld [vmem:[%s2787_s8 + $0xb0] sm:$0xff]  ;;  %v2402_v37 = vld [vmem:[%s2787_s8 + $0xb8] sm:$0xff]  ;;  %v2387_v40 = vld [vmem:[%s2787_s8 + $0x40] sm:$0xff] }
  0x64   : > { %1446 = vmatpush.bf16.msra.mxu2 %v2377_v7  ;;  %1663 = vmatpush.bf16.msra.mxu3 %v2377_v7  ;;  %v2417_v34 = vld [vmem:[%s2787_s8 + $0x130] sm:$0xff]  ;;  %v2418_v38 = vld [vmem:[%s2787_s8 + $0x138] sm:$0xff]  ;;  %v2403_v41 = vld [vmem:[%s2787_s8 + $0xc0] sm:$0xff] }
  0x65   : > { %v2433_v35 = vld [vmem:[%s2787_s8 + $0x1b0] sm:$0xff]  ;;  %v2434_v39 = vld [vmem:[%s2787_s8 + $0x1b8] sm:$0xff]  ;;  %v2419_v44 = vld [vmem:[%s2787_s8 + $0x140] sm:$0xff] }
  0x66   : > { %2118 = vmatmul.msk.bf16.vlgmr.msra.gmra.mxu0 %vm949_vm2, %v2379_v8  ;;  %2198 = vmatmul.msk.bf16.vlgmr.msra.gmra.mxu1 %vm949_vm2, %v2395_v9  ;;  %v2435_v45 = vld [vmem:[%s2787_s8 + $0x1c0] sm:$0xff]  ;;  %v2388_v56 = vld [vmem:[%s2787_s8 + $0x48] sm:$0xff] }
  0x67   : > { %2278 = vmatmul.msk.bf16.vlgmr.msra.gmra.mxu2 %vm949_vm2, %v2411_v10  ;;  %2358 = vmatmul.msk.bf16.vlgmr.msra.gmra.mxu3 %vm949_vm2, %v2427_v11  ;;  %v2866_v53 = vld [vmem:[%s2989_s2] ss:$0 sm:$0xff]  ;;  %v2404_v57 = vld [vmem:[%s2787_s8 + $0xc8] sm:$0xff] }
  0x68   : > { %v2420_v62 = vld [vmem:[%s2787_s8 + $0x148] sm:$0xff] }
  0x69   : > { %v2436_v63 = vld [vmem:[%s2787_s8 + $0x1c8] sm:$0xff] }
  0x76   : > { %2119 = vmatmul.msk.bf16.gmra.mxu0 %vm949_vm2, %v2380_v12  ;;  %2199 = vmatmul.msk.bf16.gmra.mxu1 %vm949_vm2, %v2396_v13 }
  0x77   : > { %2279 = vmatmul.msk.bf16.gmra.mxu2 %vm949_vm2, %v2412_v14  ;;  %2359 = vmatmul.msk.bf16.gmra.mxu3 %vm949_vm2, %v2428_v15  ;;  %v2389_v15 = vld [vmem:[%s2787_s8 + $0x50] sm:$0xff] }
  0x86   : > { %2120 = vmatmul.msk.bf16.gmra.mxu0 %vm949_vm2, %v2381_v16  ;;  %2200 = vmatmul.msk.bf16.gmra.mxu1 %vm949_vm2, %v2397_v17  ;;  %v2405_v16 = vld [vmem:[%s2787_s8 + $0xd0] sm:$0xff] }
  0x87   : > { %2280 = vmatmul.msk.bf16.gmra.mxu2 %vm949_vm2, %v2413_v18  ;;  %2360 = vmatmul.msk.bf16.gmra.mxu3 %vm949_vm2, %v2429_v19 }
  0x96   : > { %2121 = vmatmul.msk.bf16.gmra.mxu0 %vm949_vm2, %v2382_v20  ;;  %2201 = vmatmul.msk.bf16.gmra.mxu1 %vm949_vm2, %v2398_v21  ;;  %v2421_v21 = vld [vmem:[%s2787_s8 + $0x150] sm:$0xff] }
  0x97   : > { %2281 = vmatmul.msk.bf16.gmra.mxu2 %vm949_vm2, %v2414_v22  ;;  %2361 = vmatmul.msk.bf16.gmra.mxu3 %vm949_vm2, %v2430_v23  ;;  %v2437_v22 = vld [vmem:[%s2787_s8 + $0x1d0] sm:$0xff] }
  0xa6   : > { %2122 = vmatmul.msk.bf16.gmra.mxu0 %vm949_vm2, %v2383_v24  ;;  %2202 = vmatmul.msk.bf16.gmra.mxu1 %vm949_vm2, %v2399_v25 }
  0xa7   : > { %2282 = vmatmul.msk.bf16.gmra.mxu2 %vm949_vm2, %v2415_v26  ;;  %2362 = vmatmul.msk.bf16.gmra.mxu3 %vm949_vm2, %v2431_v27 }
  0xb6   : > { %2123 = vmatmul.msk.bf16.gmra.mxu0 %vm949_vm2, %v2384_v28  ;;  %2203 = vmatmul.msk.bf16.gmra.mxu1 %vm949_vm2, %v2400_v29 }
  0xb7   : > { %2283 = vmatmul.msk.bf16.gmra.mxu2 %vm949_vm2, %v2416_v30  ;;  %2363 = vmatmul.msk.bf16.gmra.mxu3 %vm949_vm2, %v2432_v31 }
  0xc6   : > { %2124 = vmatmul.msk.bf16.gmra.mxu0 %vm949_vm2, %v2385_v32  ;;  %2204 = vmatmul.msk.bf16.gmra.mxu1 %vm949_vm2, %v2401_v33 }
  0xc7   : > { %2284 = vmatmul.msk.bf16.gmra.mxu2 %vm949_vm2, %v2417_v34  ;;  %2364 = vmatmul.msk.bf16.gmra.mxu3 %vm949_vm2, %v2433_v35 }
  0xd6   : > { %2125 = vmatmul.msk.bf16.gmra.mxu0 %vm949_vm2, %v2386_v36  ;;  %2205 = vmatmul.msk.bf16.gmra.mxu1 %vm949_vm2, %v2402_v37 }
  0xd7   : > { %2285 = vmatmul.msk.bf16.gmra.mxu2 %vm949_vm2, %v2418_v38  ;;  %2365 = vmatmul.msk.bf16.gmra.mxu3 %vm949_vm2, %v2434_v39  ;;  %v2390_v38 = vld [vmem:[%s2787_s8 + $0x58] sm:$0xff] }
  0xd8   : > { %v2406_v39 = vld [vmem:[%s2787_s8 + $0xd8] sm:$0xff] }
  0xe3   : > { %v1014_v42 = vpop.f32.mrf.mxu0  ;;  %v1231_v43 = vpop.f32.mrf.mxu1 }
  0xe4   : > { %v1745_v50 = vmax.f32 %v1014_v42, %v1231_v43 }
  0xe6   : > { %2126 = vmatmul.msk.bf16.gmra.mxu0 %vm949_vm2, %v2387_v40  ;;  %2206 = vmatmul.msk.bf16.gmra.mxu1 %vm949_vm2, %v2403_v41 }
  0xe7   : > { %2286 = vmatmul.msk.bf16.gmra.mxu2 %vm949_vm2, %v2419_v44  ;;  %2366 = vmatmul.msk.bf16.gmra.mxu3 %vm949_vm2, %v2435_v45  ;;  %v2422_v44 = vld [vmem:[%s2787_s8 + $0x158] sm:$0xff] }
  0xe8   : > { %v2438_v45 = vld [vmem:[%s2787_s8 + $0x1d8] sm:$0xff] }
  0xea   : > { %v1448_v46 = vpop.f32.mrf.mxu2  ;;  %v1665_v47 = vpop.f32.mrf.mxu3 }
  0xeb   : > { %v1016_v48 = vpop.f32.mrf.mxu0  ;;  %v1233_v49 = vpop.f32.mrf.mxu1  ;;  %v1777_v51 = vmax.f32 %v1448_v46, %v1665_v47 }
  0xec   : > { %v1746_v58 = vmax.f32 %v1016_v48, %v1233_v49 }
  0xed   : > { %v1809_v52 = vmax.f32 %v1745_v50, %v1777_v51 }
  0xef   : > { %v1845_v0 = vadd.f32 %v2866_v53, %v1809_v52 }
  0xf1   : > { %v1877_v3 = vmax.f32 %v1845_v0, 0.0 }
  0xf2   : > { %v1450_v54 = vpop.f32.mrf.mxu2  ;;  %v1667_v55 = vpop.f32.mrf.mxu3 }
  0xf3   : > { %v1778_v59 = vmax.f32 %v1450_v54, %v1667_v55  ;;  %v1019_v60 = vpop.f32.mrf.mxu0  ;;  %v1236_v61 = vpop.f32.mrf.mxu1 }
  0xf4   : > { %v1747_v10 = vmax.f32 %v1019_v60, %v1236_v61 }
  0xf5   : > { %v1810_v1 = vmax.f32 %v1746_v58, %v1778_v59 }
  0xf6   : > { %2127 = vmatmul.msk.bf16.gmra.mxu0 %vm949_vm2, %v2388_v56  ;;  %2207 = vmatmul.msk.bf16.gmra.mxu1 %vm949_vm2, %v2404_v57 }
  0xf7   : > { %v1846_v2 = vadd.f32 %v2866_v53, %v1810_v1  ;;  %2287 = vmatmul.msk.bf16.gmra.mxu2 %vm949_vm2, %v2420_v62  ;;  %2367 = vmatmul.msk.bf16.gmra.mxu3 %vm949_vm2, %v2436_v63  ;;  %v2391_v62 = vld [vmem:[%s2787_s8 + $0x60] sm:$0xff] }
  0xf8   : > { %v2407_v63 = vld [vmem:[%s2787_s8 + $0xe0] sm:$0xff] }
  0xf9   : > { %v1878_v4 = vmax.f32 %v1846_v2, 0.0 }
  0xfa   : > { %v1453_v5 = vpop.f32.mrf.mxu2  ;;  %v1670_v6 = vpop.f32.mrf.mxu3 }
  0xfb   : > { %v2446_v7 = vpack.c.bf16 %v1878_v4, %v1877_v3  ;;  %v1021_v8 = vpop.f32.mrf.mxu0  ;;  %v1238_v9 = vpop.f32.mrf.mxu1  ;;  %v1779_v11 = vmax.f32 %v1453_v5, %v1670_v6  ;;  %v2423_v4 = vld [vmem:[%s2787_s8 + $0x160] sm:$0xff] }
  0xfc   : > { %v1748_v17 = vmax.f32 %v1021_v8, %v1238_v9  ;;  %v2439_v5 = vld [vmem:[%s2787_s8 + $0x1e0] sm:$0xff] }
  0xfd   : > { %2447 = vst [vmem:[%s2881_s17] sm:$0xff] %v2446_v7   ;;  %v1811_v12 = vmax.f32 %v1747_v10, %v1779_v11 }
  0xff   : > { %v1847_v23 = vadd.f32 %v2866_v53, %v1811_v12 }
 0x101   : > { %v1879_v26 = vmax.f32 %v1847_v23, 0.0 }
 0x102   : > { %v1455_v13 = vpop.f32.mrf.mxu2  ;;  %v1672_v14 = vpop.f32.mrf.mxu3 }
 0x103   : > { %v1780_v18 = vmax.f32 %v1455_v13, %v1672_v14  ;;  %v1024_v19 = vpop.f32.mrf.mxu0  ;;  %v1241_v20 = vpop.f32.mrf.mxu1 }
 0x104   : > { %v1749_v33 = vmax.f32 %v1024_v19, %v1241_v20 }
 0x105   : > { %v1812_v24 = vmax.f32 %v1748_v17, %v1780_v18 }
 0x106   : > { %2128 = vmatmul.msk.bf16.gmra.mxu0 %vm949_vm2, %v2389_v15  ;;  %2208 = vmatmul.msk.bf16.gmra.mxu1 %vm949_vm2, %v2405_v16 }
 0x107   : > { %v1848_v25 = vadd.f32 %v2866_v53, %v1812_v24  ;;  %2288 = vmatmul.msk.bf16.gmra.mxu2 %vm949_vm2, %v2421_v21  ;;  %2368 = vmatmul.msk.bf16.gmra.mxu3 %vm949_vm2, %v2437_v22  ;;  %v2392_v21 = vld [vmem:[%s2787_s8 + $0x68] sm:$0xff] }
 0x108   : > { %v2408_v22 = vld [vmem:[%s2787_s8 + $0xe8] sm:$0xff] }
 0x109   : > { %v1880_v27 = vmax.f32 %v1848_v25, 0.0 }
 0x10a   : > { %v1458_v28 = vpop.f32.mrf.mxu2  ;;  %v1675_v29 = vpop.f32.mrf.mxu3 }
 0x10b   : > { %v2451_v30 = vpack.c.bf16 %v1880_v27, %v1879_v26  ;;  %v1026_v31 = vpop.f32.mrf.mxu0  ;;  %v1243_v32 = vpop.f32.mrf.mxu1  ;;  %v1781_v34 = vmax.f32 %v1458_v28, %v1675_v29  ;;  %v2424_v27 = vld [vmem:[%s2787_s8 + $0x168] sm:$0xff] }
 0x10c   : > { %v1750_v40 = vmax.f32 %v1026_v31, %v1243_v32  ;;  %v2440_v28 = vld [vmem:[%s2787_s8 + $0x1e8] sm:$0xff] }
 0x10d   : > { %2523 = vst [vmem:[%s2881_s17 + $0x8] sm:$0xff] %v2451_v30   ;;  %v1813_v35 = vmax.f32 %v1749_v33, %v1781_v34 }
 0x10f   : > { %v1849_v46 = vadd.f32 %v2866_v53, %v1813_v35 }
 0x111   : > { %v1881_v49 = vmax.f32 %v1849_v46, 0.0 }
 0x112   : > { %v1460_v36 = vpop.f32.mrf.mxu2  ;;  %v1677_v37 = vpop.f32.mrf.mxu3 }
 0x113   : > { %v1782_v41 = vmax.f32 %v1460_v36, %v1677_v37  ;;  %v1029_v42 = vpop.f32.mrf.mxu0  ;;  %v1246_v43 = vpop.f32.mrf.mxu1 }
 0x114   : > { %v1751_v57 = vmax.f32 %v1029_v42, %v1246_v43 }
 0x115   : > { %v1814_v47 = vmax.f32 %v1750_v40, %v1782_v41 }
 0x116   : > { %2129 = vmatmul.msk.bf16.gmra.mxu0 %vm949_vm2, %v2390_v38  ;;  %2209 = vmatmul.msk.bf16.gmra.mxu1 %vm949_vm2, %v2406_v39 }
 0x117   : > { %v1850_v48 = vadd.f32 %v2866_v53, %v1814_v47  ;;  %2289 = vmatmul.msk.bf16.gmra.mxu2 %vm949_vm2, %v2422_v44  ;;  %2369 = vmatmul.msk.bf16.gmra.mxu3 %vm949_vm2, %v2438_v45  ;;  %v2393_v44 = vld [vmem:[%s2787_s8 + $0x70] sm:$0xff] }
 0x118   : > { %v2409_v45 = vld [vmem:[%s2787_s8 + $0xf0] sm:$0xff] }
 0x119   : > { %v1882_v50 = vmax.f32 %v1850_v48, 0.0 }
 0x11a   : > { %v1463_v51 = vpop.f32.mrf.mxu2  ;;  %v1680_v52 = vpop.f32.mrf.mxu3 }
 0x11b   : > { %v2456_v54 = vpack.c.bf16 %v1882_v50, %v1881_v49  ;;  %v1031_v55 = vpop.f32.mrf.mxu0  ;;  %v1248_v56 = vpop.f32.mrf.mxu1  ;;  %v1783_v58 = vmax.f32 %v1463_v51, %v1680_v52  ;;  %v2425_v50 = vld [vmem:[%s2787_s8 + $0x170] sm:$0xff] }
 0x11c   : > { %v1752_v0 = vmax.f32 %v1031_v55, %v1248_v56  ;;  %v2441_v51 = vld [vmem:[%s2787_s8 + $0x1f0] sm:$0xff] }
 0x11d   : > { %2524 = vst [vmem:[%s2881_s17 + $0x10] sm:$0xff] %v2456_v54   ;;  %v1815_v59 = vmax.f32 %v1751_v57, %v1783_v58 }
 0x11f   : > { %v1851_v6 = vadd.f32 %v2866_v53, %v1815_v59 }
 0x121   : > { %v1883_v9 = vmax.f32 %v1851_v6, 0.0 }
 0x122   : > { %v1465_v60 = vpop.f32.mrf.mxu2  ;;  %v1682_v61 = vpop.f32.mrf.mxu3 }
 0x123   : > { %v1784_v1 = vmax.f32 %v1465_v60, %v1682_v61  ;;  %v1034_v2 = vpop.f32.mrf.mxu0  ;;  %v1251_v3 = vpop.f32.mrf.mxu1 }
 0x124   : > { %v1753_v16 = vmax.f32 %v1034_v2, %v1251_v3 }
 0x125   : > { %v1816_v7 = vmax.f32 %v1752_v0, %v1784_v1 }
 0x126   : > { %2130 = vmatmul.msk.bf16.gmra.mxu0 %vm949_vm2, %v2391_v62  ;;  %2210 = vmatmul.msk.bf16.gmra.mxu1 %vm949_vm2, %v2407_v63 }
 0x127   : > { %v1852_v8 = vadd.f32 %v2866_v53, %v1816_v7  ;;  %2290 = vmatmul.msk.bf16.gmra.mxu2 %vm949_vm2, %v2423_v4  ;;  %2370 = vmatmul.msk.bf16.gmra.mxu3 %vm949_vm2, %v2439_v5  ;;  %v2394_v4 = vld [vmem:[%s2787_s8 + $0x78] sm:$0xff] }
 0x128   : > { %v2410_v5 = vld [vmem:[%s2787_s8 + $0xf8] sm:$0xff] }
 0x129   : > { %v1884_v10 = vmax.f32 %v1852_v8, 0.0 }
 0x12a   : > { %v1468_v11 = vpop.f32.mrf.mxu2  ;;  %v1685_v12 = vpop.f32.mrf.mxu3 }
 0x12b   : > { %v2461_v13 = vpack.c.bf16 %v1884_v10, %v1883_v9  ;;  %v1036_v14 = vpop.f32.mrf.mxu0  ;;  %v1253_v15 = vpop.f32.mrf.mxu1  ;;  %v1785_v17 = vmax.f32 %v1468_v11, %v1685_v12  ;;  %v2426_v10 = vld [vmem:[%s2787_s8 + $0x178] sm:$0xff] }
 0x12c   : > { %v1754_v23 = vmax.f32 %v1036_v14, %v1253_v15  ;;  %v2442_v11 = vld [vmem:[%s2787_s8 + $0x1f8] sm:$0xff] }
 0x12d   : > { %2525 = vst [vmem:[%s2881_s17 + $0x18] sm:$0xff] %v2461_v13   ;;  %v1817_v18 = vmax.f32 %v1753_v16, %v1785_v17 }
 0x12f   : > { %v1853_v29 = vadd.f32 %v2866_v53, %v1817_v18 }
 0x131   : > { %v1885_v32 = vmax.f32 %v1853_v29, 0.0 }
 0x132   : > { %v1470_v19 = vpop.f32.mrf.mxu2  ;;  %v1687_v20 = vpop.f32.mrf.mxu3 }
 0x133   : > { %v1786_v24 = vmax.f32 %v1470_v19, %v1687_v20  ;;  %v1039_v25 = vpop.f32.mrf.mxu0  ;;  %v1256_v26 = vpop.f32.mrf.mxu1 }
 0x134   : > { %v1755_v39 = vmax.f32 %v1039_v25, %v1256_v26 }
 0x135   : > { %v1818_v30 = vmax.f32 %v1754_v23, %v1786_v24 }
 0x136   : > { %2131 = vmatmul.msk.bf16.gmra.mxu0 %vm949_vm2, %v2392_v21  ;;  %2211 = vmatmul.msk.bf16.gmra.mxu1 %vm949_vm2, %v2408_v22 }
 0x137   : > { %v1854_v31 = vadd.f32 %v2866_v53, %v1818_v30  ;;  %2291 = vmatmul.msk.bf16.gmra.mxu2 %vm949_vm2, %v2424_v27  ;;  %2371 = vmatmul.msk.bf16.gmra.mxu3 %vm949_vm2, %v2440_v28 }
 0x139   : > { %v1886_v33 = vmax.f32 %v1854_v31, 0.0 }
 0x13a   : > { %v1473_v34 = vpop.f32.mrf.mxu2  ;;  %v1690_v35 = vpop.f32.mrf.mxu3 }
 0x13b   : > { %v2466_v36 = vpack.c.bf16 %v1886_v33, %v1885_v32  ;;  %v1041_v37 = vpop.f32.mrf.mxu0  ;;  %v1258_v38 = vpop.f32.mrf.mxu1  ;;  %v1787_v40 = vmax.f32 %v1473_v34, %v1690_v35 }
 0x13c   : > { %v1756_v46 = vmax.f32 %v1041_v37, %v1258_v38 }
 0x13d   : > { %2526 = vst [vmem:[%s2881_s17 + $0x20] sm:$0xff] %v2466_v36   ;;  %v1819_v41 = vmax.f32 %v1755_v39, %v1787_v40 }
 0x13f   : > { %v1855_v52 = vadd.f32 %v2866_v53, %v1819_v41 }
 0x141   : > { %v1887_v56 = vmax.f32 %v1855_v52, 0.0 }
 0x142   : > { %v1475_v42 = vpop.f32.mrf.mxu2  ;;  %v1692_v43 = vpop.f32.mrf.mxu3 }
 0x143   : > { %v1788_v47 = vmax.f32 %v1475_v42, %v1692_v43  ;;  %v1044_v48 = vpop.f32.mrf.mxu0  ;;  %v1261_v49 = vpop.f32.mrf.mxu1 }
 0x144   : > { %v1757_v63 = vmax.f32 %v1044_v48, %v1261_v49 }
 0x145   : > { %v1820_v54 = vmax.f32 %v1756_v46, %v1788_v47 }
 0x146   : > { %2132 = vmatmul.msk.bf16.gmra.mxu0 %vm949_vm2, %v2393_v44  ;;  %2212 = vmatmul.msk.bf16.gmra.mxu1 %vm949_vm2, %v2409_v45 }
 0x147   : > { %v1856_v55 = vadd.f32 %v2866_v53, %v1820_v54  ;;  %2292 = vmatmul.msk.bf16.gmra.mxu2 %vm949_vm2, %v2425_v50  ;;  %2372 = vmatmul.msk.bf16.gmra.mxu3 %vm949_vm2, %v2441_v51 }
 0x149   : > { %v1888_v57 = vmax.f32 %v1856_v55, 0.0 }
 0x14a   : > { %v1478_v58 = vpop.f32.mrf.mxu2  ;;  %v1695_v59 = vpop.f32.mrf.mxu3 }
 0x14b   : > { %v2471_v60 = vpack.c.bf16 %v1888_v57, %v1887_v56  ;;  %v1046_v61 = vpop.f32.mrf.mxu0  ;;  %v1263_v62 = vpop.f32.mrf.mxu1  ;;  %v1789_v0 = vmax.f32 %v1478_v58, %v1695_v59 }
 0x14c   : > { %v1758_v6 = vmax.f32 %v1046_v61, %v1263_v62 }
 0x14d   : > { %2527 = vst [vmem:[%s2881_s17 + $0x28] sm:$0xff] %v2471_v60   ;;  %v1821_v1 = vmax.f32 %v1757_v63, %v1789_v0 }
 0x14f   : > { %v1857_v12 = vadd.f32 %v2866_v53, %v1821_v1 }
 0x151   : > { %v1889_v15 = vmax.f32 %v1857_v12, 0.0 }
 0x152   : > { %v1480_v2 = vpop.f32.mrf.mxu2  ;;  %v1697_v3 = vpop.f32.mrf.mxu3 }
 0x153   : > { %v1790_v7 = vmax.f32 %v1480_v2, %v1697_v3  ;;  %v1049_v8 = vpop.f32.mrf.mxu0  ;;  %v1266_v9 = vpop.f32.mrf.mxu1 }
 0x154   : > { %v1759_v22 = vmax.f32 %v1049_v8, %v1266_v9 }
 0x155   : > { %v1822_v13 = vmax.f32 %v1758_v6, %v1790_v7 }
 0x156   : > { %2133 = vmatmul.msk.bf16.gmra.mxu0 %vm949_vm2, %v2394_v4  ;;  %2213 = vmatmul.msk.bf16.gmra.mxu1 %vm949_vm2, %v2410_v5 }
 0x157   : > { %v1858_v14 = vadd.f32 %v2866_v53, %v1822_v13  ;;  %2293 = vmatmul.msk.bf16.gmra.mxu2 %vm949_vm2, %v2426_v10  ;;  %2373 = vmatmul.msk.bf16.gmra.mxu3 %vm949_vm2, %v2442_v11 }
 0x159   : > { %v1890_v16 = vmax.f32 %v1858_v14, 0.0 }
 0x15a   : > { %v1483_v17 = vpop.f32.mrf.mxu2  ;;  %v1700_v18 = vpop.f32.mrf.mxu3 }
 0x15b   : > { %v2476_v19 = vpack.c.bf16 %v1890_v16, %v1889_v15  ;;  %v1051_v20 = vpop.f32.mrf.mxu0  ;;  %v1268_v21 = vpop.f32.mrf.mxu1  ;;  %v1791_v23 = vmax.f32 %v1483_v17, %v1700_v18 }
 0x15c   : > { %v1760_v27 = vmax.f32 %v1051_v20, %v1268_v21 }
 0x15d   : > { %2528 = vst [vmem:[%s2881_s17 + $0x30] sm:$0xff] %v2476_v19   ;;  %v1823_v24 = vmax.f32 %v1759_v22, %v1791_v23 }
 0x15f   : > { %v1859_v31 = vadd.f32 %v2866_v53, %v1823_v24 }
 0x161   : > { %v1891_v34 = vmax.f32 %v1859_v31, 0.0 }
 0x162   : > { %v1485_v25 = vpop.f32.mrf.mxu2  ;;  %v1702_v26 = vpop.f32.mrf.mxu3 }
 0x163   : > { %v1792_v28 = vmax.f32 %v1485_v25, %v1702_v26  ;;  %v1054_v29 = vpop.f32.mrf.mxu0  ;;  %v1271_v30 = vpop.f32.mrf.mxu1 }
 0x164   : > { %v1761_v41 = vmax.f32 %v1054_v29, %v1271_v30 }
 0x165   : > { %v1824_v32 = vmax.f32 %v1760_v27, %v1792_v28 }
 0x167   : > { %v1860_v33 = vadd.f32 %v2866_v53, %v1824_v32 }
 0x169   : > { %v1892_v35 = vmax.f32 %v1860_v33, 0.0 }
 0x16a   : > { %v1488_v36 = vpop.f32.mrf.mxu2  ;;  %v1705_v37 = vpop.f32.mrf.mxu3 }
 0x16b   : > { %v2481_v38 = vpack.c.bf16 %v1892_v35, %v1891_v34  ;;  %v1056_v39 = vpop.f32.mrf.mxu0  ;;  %v1273_v40 = vpop.f32.mrf.mxu1  ;;  %v1793_v42 = vmax.f32 %v1488_v36, %v1705_v37 }
 0x16c   : > { %v1762_v46 = vmax.f32 %v1056_v39, %v1273_v40 }
 0x16d   : > { %2529 = vst [vmem:[%s2881_s17 + $0x38] sm:$0xff] %v2481_v38   ;;  %v1825_v43 = vmax.f32 %v1761_v41, %v1793_v42 }
 0x16f   : > { %v1861_v50 = vadd.f32 %v2866_v53, %v1825_v43 }
 0x171   : > { %v1893_v54 = vmax.f32 %v1861_v50, 0.0 }
 0x172   : > { %v1490_v44 = vpop.f32.mrf.mxu2  ;;  %v1707_v45 = vpop.f32.mrf.mxu3 }
 0x173   : > { %v1794_v47 = vmax.f32 %v1490_v44, %v1707_v45  ;;  %v1059_v48 = vpop.f32.mrf.mxu0  ;;  %v1276_v49 = vpop.f32.mrf.mxu1 }
 0x174   : > { %v1763_v61 = vmax.f32 %v1059_v48, %v1276_v49 }
 0x175   : > { %v1826_v51 = vmax.f32 %v1762_v46, %v1794_v47 }
 0x177   : > { %v1862_v52 = vadd.f32 %v2866_v53, %v1826_v51 }
 0x179   : > { %v1894_v55 = vmax.f32 %v1862_v52, 0.0 }
 0x17a   : > { %v1493_v56 = vpop.f32.mrf.mxu2  ;;  %v1710_v57 = vpop.f32.mrf.mxu3 }
 0x17b   : > { %v2486_v58 = vpack.c.bf16 %v1894_v55, %v1893_v54  ;;  %v1061_v59 = vpop.f32.mrf.mxu0  ;;  %v1278_v60 = vpop.f32.mrf.mxu1  ;;  %v1795_v62 = vmax.f32 %v1493_v56, %v1710_v57 }
 0x17c   : > { %v1764_v2 = vmax.f32 %v1061_v59, %v1278_v60 }
 0x17d   : > { %2530 = vst [vmem:[%s2881_s17 + $0x40] sm:$0xff] %v2486_v58   ;;  %v1827_v63 = vmax.f32 %v1763_v61, %v1795_v62 }
 0x17f   : > { %v1863_v6 = vadd.f32 %v2866_v53, %v1827_v63 }
 0x181   : > { %v1895_v9 = vmax.f32 %v1863_v6, 0.0 }
 0x182   : > { %v1495_v0 = vpop.f32.mrf.mxu2  ;;  %v1712_v1 = vpop.f32.mrf.mxu3 }
 0x183   : > { %v1796_v3 = vmax.f32 %v1495_v0, %v1712_v1  ;;  %v1064_v4 = vpop.f32.mrf.mxu0  ;;  %v1281_v5 = vpop.f32.mrf.mxu1 }
 0x184   : > { %v1765_v16 = vmax.f32 %v1064_v4, %v1281_v5 }
 0x185   : > { %v1828_v7 = vmax.f32 %v1764_v2, %v1796_v3 }
 0x187   : > { %v1864_v8 = vadd.f32 %v2866_v53, %v1828_v7 }
 0x189   : > { %v1896_v10 = vmax.f32 %v1864_v8, 0.0 }
 0x18a   : > { %v1498_v11 = vpop.f32.mrf.mxu2  ;;  %v1715_v12 = vpop.f32.mrf.mxu3 }
 0x18b   : > { %v2491_v13 = vpack.c.bf16 %v1896_v10, %v1895_v9  ;;  %v1066_v14 = vpop.f32.mrf.mxu0  ;;  %v1283_v15 = vpop.f32.mrf.mxu1  ;;  %v1797_v17 = vmax.f32 %v1498_v11, %v1715_v12 }
 0x18c   : > { %v1766_v21 = vmax.f32 %v1066_v14, %v1283_v15 }
 0x18d   : > { %2531 = vst [vmem:[%s2881_s17 + $0x48] sm:$0xff] %v2491_v13   ;;  %v1829_v18 = vmax.f32 %v1765_v16, %v1797_v17 }
 0x18f   : > { %v1865_v25 = vadd.f32 %v2866_v53, %v1829_v18 }
 0x191   : > { %v1897_v28 = vmax.f32 %v1865_v25, 0.0 }
 0x192   : > { %v1500_v19 = vpop.f32.mrf.mxu2  ;;  %v1717_v20 = vpop.f32.mrf.mxu3 }
 0x193   : > { %v1798_v22 = vmax.f32 %v1500_v19, %v1717_v20  ;;  %v1069_v23 = vpop.f32.mrf.mxu0  ;;  %v1286_v24 = vpop.f32.mrf.mxu1 }
 0x194   : > { %v1767_v35 = vmax.f32 %v1069_v23, %v1286_v24 }
 0x195   : > { %v1830_v26 = vmax.f32 %v1766_v21, %v1798_v22 }
 0x197   : > { %v1866_v27 = vadd.f32 %v2866_v53, %v1830_v26 }
 0x199   : > { %v1898_v29 = vmax.f32 %v1866_v27, 0.0 }
 0x19a   : > { %v1503_v30 = vpop.f32.mrf.mxu2  ;;  %v1720_v31 = vpop.f32.mrf.mxu3 }
 0x19b   : > { %v2496_v32 = vpack.c.bf16 %v1898_v29, %v1897_v28  ;;  %v1071_v33 = vpop.f32.mrf.mxu0  ;;  %v1288_v34 = vpop.f32.mrf.mxu1  ;;  %v1799_v36 = vmax.f32 %v1503_v30, %v1720_v31 }
 0x19c   : > { %v1768_v40 = vmax.f32 %v1071_v33, %v1288_v34 }
 0x19d   : > { %2532 = vst [vmem:[%s2881_s17 + $0x50] sm:$0xff] %v2496_v32   ;;  %v1831_v37 = vmax.f32 %v1767_v35, %v1799_v36 }
 0x19f   : > { %v1867_v44 = vadd.f32 %v2866_v53, %v1831_v37 }
 0x1a1   : > { %v1899_v47 = vmax.f32 %v1867_v44, 0.0 }
 0x1a2   : > { %v1505_v38 = vpop.f32.mrf.mxu2  ;;  %v1722_v39 = vpop.f32.mrf.mxu3 }
 0x1a3   : > { %v1800_v41 = vmax.f32 %v1505_v38, %v1722_v39  ;;  %v1074_v42 = vpop.f32.mrf.mxu0  ;;  %v1291_v43 = vpop.f32.mrf.mxu1 }
 0x1a4   : > { %v1769_v55 = vmax.f32 %v1074_v42, %v1291_v43 }
 0x1a5   : > { %v1832_v45 = vmax.f32 %v1768_v40, %v1800_v41 }
 0x1a7   : > { %v1868_v46 = vadd.f32 %v2866_v53, %v1832_v45 }
 0x1a9   : > { %v1900_v48 = vmax.f32 %v1868_v46, 0.0 }
 0x1aa   : > { %v1508_v49 = vpop.f32.mrf.mxu2  ;;  %v1725_v50 = vpop.f32.mrf.mxu3 }
 0x1ab   : > { %v2501_v51 = vpack.c.bf16 %v1900_v48, %v1899_v47  ;;  %v1076_v52 = vpop.f32.mrf.mxu0  ;;  %v1293_v54 = vpop.f32.mrf.mxu1  ;;  %v1801_v56 = vmax.f32 %v1508_v49, %v1725_v50 }
 0x1ac   : > { %v1770_v60 = vmax.f32 %v1076_v52, %v1293_v54 }
 0x1ad   : > { %2533 = vst [vmem:[%s2881_s17 + $0x58] sm:$0xff] %v2501_v51   ;;  %v1833_v57 = vmax.f32 %v1769_v55, %v1801_v56 }
 0x1af   : > { %v1869_v0 = vadd.f32 %v2866_v53, %v1833_v57 }
 0x1b1   : > { %v1901_v3 = vmax.f32 %v1869_v0, 0.0 }
 0x1b2   : > { %v1510_v58 = vpop.f32.mrf.mxu2  ;;  %v1727_v59 = vpop.f32.mrf.mxu3 }
 0x1b3   : > { %v1802_v61 = vmax.f32 %v1510_v58, %v1727_v59  ;;  %v1079_v62 = vpop.f32.mrf.mxu0  ;;  %v1296_v63 = vpop.f32.mrf.mxu1 }
 0x1b4   : > { %v1771_v10 = vmax.f32 %v1079_v62, %v1296_v63 }
 0x1b5   : > { %v1834_v1 = vmax.f32 %v1770_v60, %v1802_v61 }
 0x1b7   : > { %v1870_v2 = vadd.f32 %v2866_v53, %v1834_v1 }
 0x1b9   : > { %v1902_v4 = vmax.f32 %v1870_v2, 0.0 }
 0x1ba   : > { %v1513_v5 = vpop.f32.mrf.mxu2  ;;  %v1730_v6 = vpop.f32.mrf.mxu3 }
 0x1bb   : > { %v2506_v7 = vpack.c.bf16 %v1902_v4, %v1901_v3  ;;  %v1081_v8 = vpop.f32.mrf.mxu0  ;;  %v1298_v9 = vpop.f32.mrf.mxu1  ;;  %v1803_v11 = vmax.f32 %v1513_v5, %v1730_v6 }
 0x1bc   : > { %v1772_v15 = vmax.f32 %v1081_v8, %v1298_v9 }
 0x1bd   : > { %2534 = vst [vmem:[%s2881_s17 + $0x60] sm:$0xff] %v2506_v7   ;;  %v1835_v12 = vmax.f32 %v1771_v10, %v1803_v11 }
 0x1bf   : > { %v1871_v19 = vadd.f32 %v2866_v53, %v1835_v12 }
 0x1c1   : > { %v1903_v22 = vmax.f32 %v1871_v19, 0.0 }
 0x1c2   : > { %v1515_v13 = vpop.f32.mrf.mxu2  ;;  %v1732_v14 = vpop.f32.mrf.mxu3 }
 0x1c3   : > { %v1804_v16 = vmax.f32 %v1515_v13, %v1732_v14  ;;  %v1084_v17 = vpop.f32.mrf.mxu0  ;;  %v1301_v18 = vpop.f32.mrf.mxu1 }
 0x1c4   : > { %v1773_v29 = vmax.f32 %v1084_v17, %v1301_v18 }
 0x1c5   : > { %v1836_v20 = vmax.f32 %v1772_v15, %v1804_v16 }
 0x1c7   : > { %v1872_v21 = vadd.f32 %v2866_v53, %v1836_v20 }
 0x1c9   : > { %v1904_v23 = vmax.f32 %v1872_v21, 0.0 }
 0x1ca   : > { %v1518_v24 = vpop.f32.mrf.mxu2  ;;  %v1735_v25 = vpop.f32.mrf.mxu3 }
 0x1cb   : > { %v2511_v26 = vpack.c.bf16 %v1904_v23, %v1903_v22  ;;  %v1086_v27 = vpop.f32.mrf.mxu0  ;;  %v1303_v28 = vpop.f32.mrf.mxu1  ;;  %v1805_v30 = vmax.f32 %v1518_v24, %v1735_v25 }
 0x1cc   : > { %v1774_v34 = vmax.f32 %v1086_v27, %v1303_v28 }
 0x1cd   : > { %2535 = vst [vmem:[%s2881_s17 + $0x68] sm:$0xff] %v2511_v26   ;;  %v1837_v31 = vmax.f32 %v1773_v29, %v1805_v30 }
 0x1cf   : > { %v1873_v36 = vadd.f32 %v2866_v53, %v1837_v31 }
 0x1d1   : > { %v1905_v41 = vmax.f32 %v1873_v36, 0.0 }
 0x1d2   : > { %v1520_v32 = vpop.f32.mrf.mxu2  ;;  %v1737_v33 = vpop.f32.mrf.mxu3 }
 0x1d3   : > { %v1806_v35 = vmax.f32 %v1520_v32, %v1737_v33  ;;  %v1089_v38 = vpop.f32.mrf.mxu0  ;;  %v1306_v39 = vpop.f32.mrf.mxu1 }
 0x1d4   : > { %v1775_v46 = vmax.f32 %v1089_v38, %v1306_v39 }
 0x1d5   : > { %v1838_v37 = vmax.f32 %v1774_v34, %v1806_v35 }
 0x1d7   : > { %v1874_v40 = vadd.f32 %v2866_v53, %v1838_v37 }
 0x1d9   : > { %v1906_v42 = vmax.f32 %v1874_v40, 0.0 }
 0x1da   : > { %v1523_v43 = vpop.f32.mrf.mxu2  ;;  %v1740_v44 = vpop.f32.mrf.mxu3 }
 0x1db   : > { %v2516_v45 = vpack.c.bf16 %v1906_v42, %v1905_v41  ;;  %v1807_v47 = vmax.f32 %v1523_v43, %v1740_v44  ;;  %v1091_v48 = vpop.f32.mrf.mxu0  ;;  %v1308_v49 = vpop.f32.mrf.mxu1 }
 0x1dc   : > { %v1776_v54 = vmax.f32 %v1091_v48, %v1308_v49 }
 0x1dd   : > { %2536 = vst [vmem:[%s2881_s17 + $0x70] sm:$0xff] %v2516_v45   ;;  %v1839_v50 = vmax.f32 %v1775_v46, %v1807_v47 }
 0x1df   : > { %v1875_v56 = vadd.f32 %v2866_v53, %v1839_v50 }
 0x1e1   : > { %v1907_v59 = vmax.f32 %v1875_v56, 0.0 }
 0x1e2   : > { %v1525_v51 = vpop.f32.mrf.mxu2  ;;  %v1742_v52 = vpop.f32.mrf.mxu3 }
 0x1e3   : > { %v1808_v55 = vmax.f32 %v1525_v51, %v1742_v52 }
 0x1e5   : > { %v1840_v57 = vmax.f32 %v1776_v54, %v1808_v55 }
 0x1e7   : > { %v1876_v58 = vadd.f32 %v2866_v53, %v1840_v57 }
 0x1e9   : > { %v1908_v60 = vmax.f32 %v1876_v58, 0.0 }
 0x1eb   : > { %v2521_v61 = vpack.c.bf16 %v1908_v60, %v1907_v59 }
 0x1ed   : > { %2537 = vst [vmem:[%s2881_s17 + $0x78] sm:$0xff] %v2521_v61  }
 0x1ee PF: > { %p10_p9 = scmp.ge.s32.totalorder %s2626_s16, 4   ;;  %s2991_s12 = smov %s2582_s13 }
 0x1ef   : > { %s2992_s13 = smov %s2635_s19  ;;  %s2993_s14 = smov %s2626_s16 }
 0x1f0   :  { %12 = sbr.rel (!%p10_p9) target bundleno = 2 (0x2), region = 108 }

// kernel: net_forward.4
= control target key start
LH: loop header
LB: loop body
LE: loop exit
PB: predicated region body
PF: predicated region fallthrough
CT: control target
= control target key end

     0   :  { %vm172_vm0 = vcmask 1042432   ;;  %vm159_vm1 = vcmask 179200   ;;  %s1216_s1 = inlined_call_operand.vmem [shape: bf16[150,128], index: 1, kind: input, shape index: {}]   ;;  %s1217_s0 = inlined_call_operand.vmem [shape: bf16[4,64,150], index: 0, kind: input, shape index: {}]   ;;  %s1218_s2 = inlined_call_operand.vmem [shape: f32[1,128], index: 2, kind: input, shape index: {}]   ;;  %s1219_s3 = inlined_call_operand.vmem [shape: bf16[64,128], index: 3, kind: output, shape index: {}]  }
   0x1   :  { %v884_v0 = vld [vmem:[%s1216_s1 + $0x38] sm:$0xff]  ;;  %v33_v1 = vld [vmem:[%s1216_s1 + $0x48] sm:$0x7]  ;;  %v894_v2 = vld [vmem:[%s1216_s1 + $0x30] sm:$0xff] }
   0x2   :  { %176 = vmatpush.bf16.msra.mxu0 %v884_v0  ;;  %282 = vmatpush.bf16.msra.mxu2 %v884_v0  ;;  %v139_v3 = vunpack.c.l.b16 %v33_v1  ;;  %v801_v5 = vld [vmem:[%s1216_s1 + $0x28] sm:$0xff]  ;;  %v804_v7 = vld [vmem:[%s1216_s1 + $0x40] sm:$0xff]  ;;  %v799_v15 = vld [vmem:[%s1216_s1 + $0x18] sm:$0xff] }
   0x3   :  { %v813_v8 = vld [vmem:[%s1217_s0 + $0x44] sm:$0xf]  ;;  %v692_v9 = vld [vmem:[%s1217_s0 + $0x48] sm:$0xf0]  ;;  %v798_v16 = vld [vmem:[%s1216_s1 + $0x10] sm:$0xff] }
   0x4   :  { %v149_v4 = vpack.c.b16 %v139_v3, %v139_v3  ;;  %v805_v10 = vld [vmem:[%s1217_s0 + $0x4] sm:$0xf]  ;;  %v620_v11 = vld [vmem:[%s1217_s0 + $0x8] sm:$0xf0]  ;;  %v695_v13 = vor.u32 %v813_v8, %v692_v9  ;;  %v618_v19 = vld [vmem:[%s1217_s0] sm:$0xf] }
   0x5   :  { %v800_v12 = vld [vmem:[%s1216_s1 + $0x20] sm:$0xff]  ;;  %v623_v14 = vor.u32 %v805_v10, %v620_v11  ;;  %v797_v17 = vld [vmem:[%s1216_s1 + $0x8] sm:$0xff]  ;;  %v815_v20 = vld [vmem:[%s1217_s0 + $0x54] sm:$0xf] }
   0x6   :  { %177 = vmatpush.bf16.msra.mxu0 %v894_v2  ;;  %283 = vmatpush.bf16.msra.mxu2 %v894_v2  ;;  %v174_v6 = vsel %vm172_vm0, %v149_v4, 0  ;;  %v796_v18 = vld [vmem:[%s1216_s1] sm:$0xff]  ;;  %v700_v21 = vld [vmem:[%s1217_s0 + $0x58] sm:$0xf0]  ;;  %v807_v22 = vld [vmem:[%s1217_s0 + $0x14] sm:$0xf] }
   0x7   :  { %317 = vmatpush.bf16.msra.mxu3 %v174_v6  ;;  %211 = vmatpush.bf16.msra.mxu1 %v174_v6  ;;  %v628_v23 = vld [vmem:[%s1217_s0 + $0x18] sm:$0xf0]  ;;  %v806_v24 = vld [vmem:[%s1217_s0 + $0x4] sm:$0xf0]  ;;  %v690_v25 = vld [vmem:[%s1217_s0 + $0x40] sm:$0xf]  ;;  %v703_v27 = vor.u32 %v815_v20, %v700_v21 }
   0x8   :  { %v814_v26 = vld [vmem:[%s1217_s0 + $0x44] sm:$0xf0]  ;;  %v631_v28 = vor.u32 %v807_v22, %v628_v23  ;;  %v619_v29 = vor.u32 %v806_v24, %v618_v19  ;;  %v626_v31 = vld [vmem:[%s1217_s0 + $0x10] sm:$0xf]  ;;  %v817_v32 = vld [vmem:[%s1217_s0 + $0x64] sm:$0xf] }
   0x9   :  { %v691_v30 = vor.u32 %v814_v26, %v690_v25  ;;  %v708_v33 = vld [vmem:[%s1217_s0 + $0x68] sm:$0xf0]  ;;  %v809_v34 = vld [vmem:[%s1217_s0 + $0x24] sm:$0xf]  ;;  %v808_v36 = vld [vmem:[%s1217_s0 + $0x14] sm:$0xf0] }
   0xa   :  { %178 = vmatpush.bf16.msra.mxu0 %v801_v5  ;;  %284 = vmatpush.bf16.msra.mxu2 %v801_v5  ;;  %v636_v35 = vld [vmem:[%s1217_s0 + $0x28] sm:$0xf0]  ;;  %v698_v37 = vld [vmem:[%s1217_s0 + $0x50] sm:$0xf]  ;;  %v816_v38 = vld [vmem:[%s1217_s0 + $0x54] sm:$0xf0]  ;;  %v711_v39 = vor.u32 %v817_v32, %v708_v33  ;;  %v627_v41 = vor.u32 %v808_v36, %v626_v31 }
   0xb   :  { %318 = vmatpush.bf16.msra.mxu3 %v804_v7  ;;  %212 = vmatpush.bf16.msra.mxu1 %v804_v7  ;;  %v639_v40 = vor.u32 %v809_v34, %v636_v35  ;;  %v699_v42 = vor.u32 %v816_v38, %v698_v37  ;;  %v634_v43 = vld [vmem:[%s1217_s0 + $0x20] sm:$0xf]  ;;  %v819_v44 = vld [vmem:[%s1217_s0 + $0x74] sm:$0xf]  ;;  %v716_v45 = vld [vmem:[%s1217_s0 + $0x78] sm:$0xf0] }
   0xc   :  { %v811_v46 = vld [vmem:[%s1217_s0 + $0x34] sm:$0xf]  ;;  %v644_v47 = vld [vmem:[%s1217_s0 + $0x38] sm:$0xf0]  ;;  %v810_v48 = vld [vmem:[%s1217_s0 + $0x24] sm:$0xf0]  ;;  %v719_v51 = vor.u32 %v819_v44, %v716_v45 }
   0xd   :  { %v706_v49 = vld [vmem:[%s1217_s0 + $0x60] sm:$0xf]  ;;  %v818_v50 = vld [vmem:[%s1217_s0 + $0x64] sm:$0xf0]  ;;  %v647_v52 = vor.u32 %v811_v46, %v644_v47  ;;  %v635_v53 = vor.u32 %v810_v48, %v634_v43  ;;  %v642_v55 = vld [vmem:[%s1217_s0 + $0x30] sm:$0xf] }
   0xe   :  { %179 = vmatpush.bf16.msra.mxu0 %v800_v12  ;;  %285 = vmatpush.bf16.msra.mxu2 %v800_v12  ;;  %v707_v54 = vor.u32 %v818_v50, %v706_v49  ;;  %v821_v56 = vld [vmem:[%s1217_s0 + $0x84] sm:$0xf]  ;;  %v728_v57 = vld [vmem:[%s1217_s0 + $0x88] sm:$0xf0]  ;;  %v726_v58 = vld [vmem:[%s1217_s0 + $0x80] sm:$0xf] }
   0xf   :  { %423 = vmatpush.bf16.msrb.mxu3 %v174_v6  ;;  %388 = vmatpush.bf16.msrb.mxu1 %v884_v0  ;;  %v822_v59 = vld [vmem:[%s1217_s0 + $0x84] sm:$0xf0]  ;;  %v812_v60 = vld [vmem:[%s1217_s0 + $0x34] sm:$0xf0]  ;;  %v714_v61 = vld [vmem:[%s1217_s0 + $0x70] sm:$0xf]  ;;  %v731_v63 = vor.u32 %v821_v56, %v728_v57 }
  0x10   :  { %720 = vmatmul.msk.bf16.vlgmr.msra.gmra.mxu3 %vm159_vm1, %v695_v13  ;;  %684 = vmatmul.msk.bf16.vlgmr.msra.gmra.mxu1 %vm159_vm1, %v623_v14  ;;  %v820_v62 = vld [vmem:[%s1217_s0 + $0x74] sm:$0xf0]  ;;  %v643_v1 = vor.u32 %v812_v60, %v642_v55  ;;  %v762_v3 = vld [vmem:[%s1217_s0 + $0xc0] sm:$0xf]  ;;  %v823_v4 = vld [vmem:[%s1217_s0 + $0x94] sm:$0xf] }
  0x11   :  { %v830_v8 = vld [vmem:[%s1217_s0 + $0xc4] sm:$0xf0]  ;;  %v829_v9 = vld [vmem:[%s1217_s0 + $0xc4] sm:$0xf]  ;;  %v764_v10 = vld [vmem:[%s1217_s0 + $0xc8] sm:$0xf0] }
  0x12   :  { %180 = vmatpush.bf16.msra.mxu0 %v799_v15  ;;  %286 = vmatpush.bf16.msra.mxu2 %v799_v15  ;;  %v763_v13 = vor.u32 %v830_v8, %v762_v3  ;;  %v767_v14 = vor.u32 %v829_v9, %v764_v10  ;;  %v826_v19 = vld [vmem:[%s1217_s0 + $0xa4] sm:$0xf0]  ;;  %v832_v20 = vld [vmem:[%s1217_s0 + $0xd4] sm:$0xf0]  ;;  %v831_v21 = vld [vmem:[%s1217_s0 + $0xd4] sm:$0xf] }
  0x13   :  { %389 = vmatpush.bf16.msrb.mxu1 %v894_v2  ;;  %424 = vmatpush.bf16.msrb.mxu3 %v804_v7  ;;  %v772_v22 = vld [vmem:[%s1217_s0 + $0xd8] sm:$0xf0]  ;;  %v828_v31 = vld [vmem:[%s1217_s0 + $0xb4] sm:$0xf0]  ;;  %v834_v32 = vld [vmem:[%s1217_s0 + $0xe4] sm:$0xf0] }
  0x14   :  { %v775_v26 = vor.u32 %v831_v21, %v772_v22  ;;  %v833_v33 = vld [vmem:[%s1217_s0 + $0xe4] sm:$0xf]  ;;  %v780_v34 = vld [vmem:[%s1217_s0 + $0xe8] sm:$0xf0] }
  0x15   :  { %v783_v38 = vor.u32 %v833_v33, %v780_v34 }
  0x16   :  { %181 = vmatpush.bf16.msra.mxu0 %v798_v16  ;;  %287 = vmatpush.bf16.msra.mxu2 %v798_v16 }
  0x17   :  { %390 = vmatpush.bf16.msrb.mxu1 %v801_v5 }
  0x1a   :  { %182 = vmatpush.bf16.msra.mxu0 %v797_v17  ;;  %288 = vmatpush.bf16.msra.mxu2 %v797_v17 }
  0x1b   :  { %391 = vmatpush.bf16.msrb.mxu1 %v800_v12 }
  0x1e   :  { %183 = vmatpush.bf16.msra.mxu0 %v796_v18  ;;  %289 = vmatpush.bf16.msra.mxu2 %v796_v18 }
  0x1f   :  { %392 = vmatpush.bf16.msrb.mxu1 %v799_v15 }
  0x20   :  { %721 = vmatmul.msk.bf16.gmra.mxu3 %vm159_vm1, %v703_v27  ;;  %685 = vmatmul.msk.bf16.gmra.mxu1 %vm159_vm1, %v631_v28  ;;  %v778_v27 = vld [vmem:[%s1217_s0 + $0xe0] sm:$0xf]  ;;  %v827_v28 = vld [vmem:[%s1217_s0 + $0xb4] sm:$0xf] }
  0x21   :  { %184 = vmatmul.bf16.vlgmr.msra.gmra.mxu0 %v619_v29  ;;  %290 = vmatmul.bf16.vlgmr.msra.gmra.mxu2 %v691_v30  ;;  %v752_v29 = vld [vmem:[%s1217_s0 + $0xb8] sm:$0xf0]  ;;  %v750_v30 = vld [vmem:[%s1217_s0 + $0xb0] sm:$0xf]  ;;  %v779_v37 = vor.u32 %v834_v32, %v778_v27 }
  0x22   :  { %529 = vmatpush.bf16.msrb.mxu2 %v174_v6  ;;  %494 = vmatpush.bf16.msrb.mxu0 %v884_v0  ;;  %v727_v0 = vor.u32 %v822_v59, %v726_v58  ;;  %v734_v6 = vld [vmem:[%s1217_s0 + $0x90] sm:$0xf]  ;;  %v755_v35 = vor.u32 %v827_v28, %v752_v29  ;;  %v751_v36 = vor.u32 %v828_v31, %v750_v30 }
  0x23   :  { %393 = vmatpush.bf16.msrb.mxu1 %v798_v16 }
  0x26   :  { %495 = vmatpush.bf16.msrb.mxu0 %v894_v2  ;;  %530 = vmatpush.bf16.msrb.mxu2 %v804_v7  ;;  %v715_v2 = vor.u32 %v820_v62, %v714_v61  ;;  %v824_v7 = vld [vmem:[%s1217_s0 + $0x94] sm:$0xf0] }
  0x27   :  { %394 = vmatpush.bf16.msrb.mxu1 %v797_v17 }
  0x2a   :  { %496 = vmatpush.bf16.msrb.mxu0 %v801_v5  ;;  %v736_v5 = vld [vmem:[%s1217_s0 + $0x98] sm:$0xf0] }
  0x2b   :  { %395 = vmatpush.bf16.msrb.mxu1 %v796_v18  ;;  %v739_v11 = vor.u32 %v823_v4, %v736_v5 }
  0x2e   :  { %497 = vmatpush.bf16.msrb.mxu0 %v800_v12  ;;  %v735_v12 = vor.u32 %v824_v7, %v734_v6 }
  0x30   :  { %722 = vmatmul.msk.bf16.gmra.mxu3 %vm159_vm1, %v711_v39  ;;  %686 = vmatmul.msk.bf16.gmra.mxu1 %vm159_vm1, %v639_v40  ;;  %v786_v39 = vld [vmem:[%s1217_s0 + $0xf0] sm:$0xf]  ;;  %v836_v40 = vld [vmem:[%s1217_s0 + $0xf4] sm:$0xf0] }
  0x31   :  { %189 = vmatmul.bf16.gmra.mxu0 %v627_v41  ;;  %295 = vmatmul.bf16.gmra.mxu2 %v699_v42  ;;  %v835_v41 = vld [vmem:[%s1217_s0 + $0xf4] sm:$0xf]  ;;  %v788_v42 = vld [vmem:[%s1217_s0 + $0xf8] sm:$0xf0]  ;;  %v787_v44 = vor.u32 %v836_v40, %v786_v39 }
  0x32   :  { %498 = vmatpush.bf16.msrb.mxu0 %v799_v15  ;;  %v770_v15 = vld [vmem:[%s1217_s0 + $0xd0] sm:$0xf]  ;;  %v791_v45 = vor.u32 %v835_v41, %v788_v42 }
  0x33   :  { %v771_v25 = vor.u32 %v832_v20, %v770_v15 }
  0x36   :  { %499 = vmatpush.bf16.msrb.mxu0 %v798_v16  ;;  %v825_v16 = vld [vmem:[%s1217_s0 + $0xa4] sm:$0xf] }
  0x3a   :  { %500 = vmatpush.bf16.msrb.mxu0 %v797_v17  ;;  %v744_v17 = vld [vmem:[%s1217_s0 + $0xa8] sm:$0xf0] }
  0x3b   :  { %v747_v23 = vor.u32 %v825_v16, %v744_v17 }
  0x3e   :  { %501 = vmatpush.bf16.msrb.mxu0 %v796_v18  ;;  %v742_v18 = vld [vmem:[%s1217_s0 + $0xa0] sm:$0xf] }
  0x3f   :  { %v743_v24 = vor.u32 %v826_v19, %v742_v18 }
  0x40   :  { %723 = vmatmul.msk.bf16.gmra.mxu3 %vm159_vm1, %v719_v51  ;;  %687 = vmatmul.msk.bf16.gmra.mxu1 %vm159_vm1, %v647_v52 }
  0x41   :  { %194 = vmatmul.bf16.gmra.mxu0 %v635_v53  ;;  %300 = vmatmul.bf16.gmra.mxu2 %v707_v54 }
  0x50   :  { %756 = vmatmul.msk.bf16.vlgmr.msrb.gmra.mxu3 %vm159_vm1, %v731_v63  ;;  %396 = vmatmul.bf16.vlgmr.msrb.gmra.mxu1 %v727_v0 }
  0x51   :  { %199 = vmatmul.bf16.gmra.mxu0 %v643_v1  ;;  %305 = vmatmul.bf16.gmra.mxu2 %v715_v2 }
  0x60   :  { %757 = vmatmul.msk.bf16.gmra.mxu3 %vm159_vm1, %v739_v11  ;;  %401 = vmatmul.bf16.gmra.mxu1 %v735_v12 }
  0x61   :  { %502 = vmatmul.bf16.vlgmr.msrb.gmra.mxu0 %v763_v13  ;;  %792 = vmatmul.msk.bf16.vlgmr.msrb.gmra.mxu2 %vm159_vm1, %v767_v14 }
  0x70   :  { %758 = vmatmul.msk.bf16.gmra.mxu3 %vm159_vm1, %v747_v23  ;;  %406 = vmatmul.bf16.gmra.mxu1 %v743_v24 }
  0x71   :  { %507 = vmatmul.bf16.gmra.mxu0 %v771_v25  ;;  %793 = vmatmul.msk.bf16.gmra.mxu2 %vm159_vm1, %v775_v26 }
  0x80   :  { %759 = vmatmul.msk.bf16.gmra.mxu3 %vm159_vm1, %v755_v35  ;;  %411 = vmatmul.bf16.gmra.mxu1 %v751_v36 }
  0x81   :  { %512 = vmatmul.bf16.gmra.mxu0 %v779_v37  ;;  %794 = vmatmul.msk.bf16.gmra.mxu2 %vm159_vm1, %v783_v38 }
  0x8d   :  { %v214_v43 = vpop.f32.mrf.mxu1 }
  0x91   :  { %517 = vmatmul.bf16.gmra.mxu0 %v787_v44  ;;  %795 = vmatmul.msk.bf16.gmra.mxu2 %vm159_vm1, %v791_v45 }
  0x93   :  { %v320_v46 = vpop.f32.mrf.mxu3 }
  0x95   :  { %v216_v47 = vpop.f32.mrf.mxu1 }
  0x9b   :  { %v322_v48 = vpop.f32.mrf.mxu3 }
  0x9d   :  { %v219_v49 = vpop.f32.mrf.mxu1 }
  0x9e   :  { %v185_v50 = vpop.f32.mrf.mxu0 }
  0x9f   :  { %v1131_v51 = vadd.f32 %v214_v43, %v185_v50 }
  0xa3   :  { %v325_v52 = vpop.f32.mrf.mxu3 }
  0xa4   :  { %v291_v53 = vpop.f32.mrf.mxu2 }
  0xa5   :  { %v321_v54 = vadd.f32 %v320_v46, %v291_v53  ;;  %v221_v55 = vpop.f32.mrf.mxu1 }
  0xa6   :  { %v187_v56 = vpop.f32.mrf.mxu0 }
  0xa7   :  { %v552_v57 = vmax.f32 %v1131_v51, %v321_v54  ;;  %v1134_v58 = vadd.f32 %v216_v47, %v187_v56 }
  0xab   :  { %v327_v59 = vpop.f32.mrf.mxu3 }
  0xac   :  { %v293_v60 = vpop.f32.mrf.mxu2 }
  0xad   :  { %v323_v61 = vadd.f32 %v322_v48, %v293_v60  ;;  %v224_v62 = vpop.f32.mrf.mxu1 }
  0xae   :  { %v190_v63 = vpop.f32.mrf.mxu0 }
  0xaf   :  { %v553_v0 = vmax.f32 %v1134_v58, %v323_v61  ;;  %v1137_v1 = vadd.f32 %v219_v49, %v190_v63 }
  0xb3   :  { %v330_v2 = vpop.f32.mrf.mxu3 }
  0xb4   :  { %v296_v3 = vpop.f32.mrf.mxu2 }
  0xb5   :  { %v1139_v4 = vadd.f32 %v325_v52, %v296_v3  ;;  %v226_v5 = vpop.f32.mrf.mxu1  ;;  %v1176_v52 = vld [vmem:[%s1218_s2] ss:$0 sm:$0xff] }
  0xb6   :  { %v192_v6 = vpop.f32.mrf.mxu0 }
  0xb7   :  { %v554_v7 = vmax.f32 %v1137_v1, %v1139_v4  ;;  %v1143_v8 = vadd.f32 %v221_v55, %v192_v6 }
  0xbb   :  { %v332_v9 = vpop.f32.mrf.mxu3 }
  0xbc   :  { %v298_v10 = vpop.f32.mrf.mxu2 }
  0xbd   :  { %v1145_v11 = vadd.f32 %v327_v59, %v298_v10  ;;  %v229_v15 = vpop.f32.mrf.mxu1 }
  0xbe   :  { %v195_v12 = vpop.f32.mrf.mxu0 }
  0xbf   :  { %v555_v13 = vmax.f32 %v1143_v8, %v1145_v11  ;;  %v1149_v14 = vadd.f32 %v224_v62, %v195_v12 }
  0xc3   :  { %v335_v16 = vpop.f32.mrf.mxu3 }
  0xc4   :  { %v301_v17 = vpop.f32.mrf.mxu2 }
  0xc5   :  { %v1151_v18 = vadd.f32 %v330_v2, %v301_v17  ;;  %v231_v22 = vpop.f32.mrf.mxu1 }
  0xc6   :  { %v197_v19 = vpop.f32.mrf.mxu0 }
  0xc7   :  { %v556_v20 = vmax.f32 %v1149_v14, %v1151_v18  ;;  %v1155_v21 = vadd.f32 %v226_v5, %v197_v19 }
  0xcb   :  { %v337_v23 = vpop.f32.mrf.mxu3 }
  0xcc   :  { %v303_v24 = vpop.f32.mrf.mxu2 }
  0xcd   :  { %v1157_v25 = vadd.f32 %v332_v9, %v303_v24  ;;  %v397_v29 = vpop.f32.mrf.mxu1 }
  0xce   :  { %v200_v26 = vpop.f32.mrf.mxu0 }
  0xcf   :  { %v557_v27 = vmax.f32 %v1155_v21, %v1157_v25  ;;  %v1161_v28 = vadd.f32 %v229_v15, %v200_v26 }
  0xd3   :  { %v426_v31 = vpop.f32.mrf.mxu3 }
  0xd4   :  { %v306_v30 = vpop.f32.mrf.mxu2  ;;  %v427_v43 = vadd.f32 %v426_v31, %v397_v29 }
  0xd5   :  { %v1163_v32 = vadd.f32 %v335_v16, %v306_v30  ;;  %v399_v38 = vpop.f32.mrf.mxu1 }
  0xd6   :  { %v202_v33 = vpop.f32.mrf.mxu0 }
  0xd7   :  { %v558_v34 = vmax.f32 %v1161_v28, %v1163_v32  ;;  %v1167_v35 = vadd.f32 %v231_v22, %v202_v33 }
  0xdb   :  { %v428_v40 = vpop.f32.mrf.mxu3 }
  0xdc   :  { %v308_v36 = vpop.f32.mrf.mxu2  ;;  %v429_v50 = vadd.f32 %v428_v40, %v399_v38 }
  0xdd   :  { %v1169_v37 = vadd.f32 %v337_v23, %v308_v36  ;;  %v402_v46 = vpop.f32.mrf.mxu1 }
  0xde   :  { %v503_v39 = vpop.f32.mrf.mxu0 }
  0xdf   :  { %v559_v41 = vmax.f32 %v1167_v35, %v1169_v37 }
  0xe3   :  { %v431_v47 = vpop.f32.mrf.mxu3 }
  0xe4   :  { %v532_v42 = vpop.f32.mrf.mxu2  ;;  %v432_v2 = vadd.f32 %v431_v47, %v402_v46 }
  0xe5   :  { %v533_v44 = vadd.f32 %v532_v42, %v503_v39  ;;  %v404_v59 = vpop.f32.mrf.mxu1 }
  0xe6   :  { %v505_v45 = vpop.f32.mrf.mxu0 }
  0xe7   :  { %v560_v48 = vmax.f32 %v427_v43, %v533_v44 }
  0xe9   :  { %v568_v51 = vmax.f32 %v552_v57, %v560_v48 }
  0xeb   :  { %v580_v56 = vadd.f32 %v1176_v52, %v568_v51  ;;  %v433_v60 = vpop.f32.mrf.mxu3 }
  0xec   :  { %v534_v49 = vpop.f32.mrf.mxu2 }
  0xed   :  { %v535_v53 = vadd.f32 %v534_v49, %v505_v45  ;;  %v588_v63 = vmax.f32 %v580_v56, 0.0  ;;  %v407_v10 = vpop.f32.mrf.mxu1 }
  0xee   :  { %v508_v54 = vpop.f32.mrf.mxu0 }
  0xef   :  { %v561_v55 = vmax.f32 %v429_v50, %v535_v53 }
  0xf1   :  { %v569_v58 = vmax.f32 %v553_v0, %v561_v55  ;;  %v434_v0 = vadd.f32 %v433_v60, %v404_v59 }
  0xf3   :  { %v581_v61 = vadd.f32 %v1176_v52, %v569_v58  ;;  %v436_v12 = vpop.f32.mrf.mxu3 }
  0xf4   :  { %v537_v62 = vpop.f32.mrf.mxu2  ;;  %v437_v31 = vadd.f32 %v436_v12, %v407_v10 }
  0xf5   :  { %v589_v3 = vmax.f32 %v581_v61, 0.0  ;;  %v538_v57 = vadd.f32 %v537_v62, %v508_v54  ;;  %v409_v38 = vpop.f32.mrf.mxu1 }
  0xf6   :  { %v510_v5 = vpop.f32.mrf.mxu0 }
  0xf7   :  { %v840_v6 = vpack.c.bf16 %v589_v3, %v588_v63  ;;  %v562_v9 = vmax.f32 %v432_v2, %v538_v57 }
  0xf9   :  { %841 = vst [vmem:[%s1219_s3] sm:$0xff] %v840_v6   ;;  %v570_v16 = vmax.f32 %v554_v7, %v562_v9 }
  0xfb   :  { %v582_v23 = vadd.f32 %v1176_v52, %v570_v16  ;;  %v438_v39 = vpop.f32.mrf.mxu3 }
  0xfc   :  { %v539_v15 = vpop.f32.mrf.mxu2  ;;  %v439_v42 = vadd.f32 %v438_v39, %v409_v38 }
  0xfd   :  { %v540_v17 = vadd.f32 %v539_v15, %v510_v5  ;;  %v590_v30 = vmax.f32 %v582_v23, 0.0  ;;  %v412_v43 = vpop.f32.mrf.mxu1 }
  0xfe   :  { %v513_v19 = vpop.f32.mrf.mxu0 }
  0xff   :  { %v563_v22 = vmax.f32 %v434_v0, %v540_v17 }
 0x101   :  { %v571_v24 = vmax.f32 %v555_v13, %v563_v22 }
 0x103   :  { %v583_v26 = vadd.f32 %v1176_v52, %v571_v24  ;;  %v441_v44 = vpop.f32.mrf.mxu3 }
 0x104   :  { %v542_v29 = vpop.f32.mrf.mxu2  ;;  %v442_v51 = vadd.f32 %v441_v44, %v412_v43 }
 0x105   :  { %v591_v33 = vmax.f32 %v583_v26, 0.0  ;;  %v543_v36 = vadd.f32 %v542_v29, %v513_v19 }
 0x106   :  { %v515_v4 = vpop.f32.mrf.mxu0 }
 0x107   :  { %v845_v1 = vpack.c.bf16 %v591_v33, %v590_v30  ;;  %v564_v7 = vmax.f32 %v437_v31, %v543_v36 }
 0x109   :  { %857 = vst [vmem:[%s1219_s3 + $0x8] sm:$0xff] %v845_v1   ;;  %v572_v8 = vmax.f32 %v556_v20, %v564_v7  ;;  %v414_v20 = vpop.f32.mrf.mxu1 }
 0x10b   :  { %v584_v45 = vadd.f32 %v1176_v52, %v572_v8  ;;  %v443_v55 = vpop.f32.mrf.mxu3 }
 0x10c   :  { %v544_v40 = vpop.f32.mrf.mxu2  ;;  %v444_v21 = vadd.f32 %v443_v55, %v414_v20 }
 0x10d   :  { %v545_v11 = vadd.f32 %v544_v40, %v515_v4  ;;  %v592_v50 = vmax.f32 %v584_v45, 0.0 }
 0x10e   :  { %v518_v47 = vpop.f32.mrf.mxu0 }
 0x10f   :  { %v565_v13 = vmax.f32 %v439_v42, %v545_v11 }
 0x111   :  { %v573_v46 = vmax.f32 %v557_v27, %v565_v13 }
 0x113   :  { %v585_v48 = vadd.f32 %v1176_v52, %v573_v46 }
 0x114   :  { %v547_v49 = vpop.f32.mrf.mxu2 }
 0x115   :  { %v593_v53 = vmax.f32 %v585_v48, 0.0  ;;  %v548_v54 = vadd.f32 %v547_v49, %v518_v47 }
 0x116   :  { %v520_v56 = vpop.f32.mrf.mxu0 }
 0x117   :  { %v850_v14 = vpack.c.bf16 %v593_v53, %v592_v50  ;;  %v566_v18 = vmax.f32 %v442_v51, %v548_v54 }
 0x119   :  { %858 = vst [vmem:[%s1219_s3 + $0x10] sm:$0xff] %v850_v14   ;;  %v574_v25 = vmax.f32 %v558_v34, %v566_v18 }
 0x11b   :  { %v586_v60 = vadd.f32 %v1176_v52, %v574_v25 }
 0x11c   :  { %v549_v58 = vpop.f32.mrf.mxu2 }
 0x11d   :  { %v550_v27 = vadd.f32 %v549_v58, %v520_v56  ;;  %v594_v63 = vmax.f32 %v586_v60, 0.0 }
 0x11f   :  { %v567_v59 = vmax.f32 %v444_v21, %v550_v27 }
 0x121   :  { %v575_v61 = vmax.f32 %v559_v41, %v567_v59 }
 0x123   :  { %v587_v62 = vadd.f32 %v1176_v52, %v575_v61 }
 0x125   :  { %v595_v2 = vmax.f32 %v587_v62, 0.0 }
 0x127   :  { %v855_v3 = vpack.c.bf16 %v595_v2, %v594_v63 }
 0x129   :  { %859 = vst [vmem:[%s1219_s3 + $0x18] sm:$0xff] %v855_v3  }

// kernel: net_forward.5
= control target key start
LH: loop header
LB: loop body
LE: loop exit
PB: predicated region body
PF: predicated region fallthrough
CT: control target
= control target key end

     0   :  { %vm248_vm0 = vcmask 130048   ;;  %s752_s1 = inlined_call_operand.vmem [shape: bf16[400,128], index: 1, kind: input, shape index: {}]   ;;  %s753_s0 = inlined_call_operand.vmem [shape: bf16[16,400], index: 0, kind: input, shape index: {}]   ;;  %s754_s3 = inlined_call_operand.vmem [shape: bf16[128,128], index: 3, kind: input, shape index: {}]   ;;  %s755_s2 = inlined_call_operand.vmem [shape: f32[1,128], index: 2, kind: input, shape index: {}]   ;;  %s756_s4 = inlined_call_operand.vmem [shape: f32[1,128], index: 4, kind: input, shape index: {}]   ;;  %s757_s5 = inlined_call_operand.vmem [shape: f32[16,128], index: 5, kind: output, shape index: {}]  }
   0x1   :  { %v559_v0 = vld [vmem:[%s752_s1 + $0x38] sm:$0xff]  ;;  %v558_v3 = vld [vmem:[%s752_s1 + $0x30] sm:$0xff]  ;;  %v557_v6 = vld [vmem:[%s752_s1 + $0x28] sm:$0xff] }
   0x2   :  { %v567_v1 = vld [vmem:[%s752_s1 + $0x78] sm:$0xff]  ;;  %252 = vmatpush.bf16.msra.mxu0 %v559_v0  ;;  %v566_v4 = vld [vmem:[%s752_s1 + $0x70] sm:$0xff]  ;;  %v565_v7 = vld [vmem:[%s752_s1 + $0x68] sm:$0xff] }
   0x3   :  { %v575_v2 = vld [vmem:[%s752_s1 + $0xb8] sm:$0xff]  ;;  %266 = vmatpush.bf16.msra.mxu1 %v567_v1  ;;  %v574_v5 = vld [vmem:[%s752_s1 + $0xb0] sm:$0xff]  ;;  %v576_v8 = vld [vmem:[%s752_s1 + $0xc0] sm:$0xff] }
   0x4   :  { %280 = vmatpush.bf16.msra.mxu2 %v575_v2  ;;  %v573_v9 = vld [vmem:[%s752_s1 + $0xa8] sm:$0xff]  ;;  %v411_v11 = vld [vmem:[%s753_s0 + $0x18] sm:$0xf0]  ;;  %301 = vmatpush.bf16.msra.mxu3 %v576_v8  ;;  %v556_v13 = vld [vmem:[%s752_s1 + $0x20] sm:$0xff] }
   0x5   :  { %v549_v10 = vld [vmem:[%s753_s0 + $0xc] sm:$0xf]  ;;  %v564_v14 = vld [vmem:[%s752_s1 + $0x60] sm:$0xff]  ;;  %v584_v16 = vld [vmem:[%s754_s3 + $0x38] sm:$0xff] }
   0x6   :  { %253 = vmatpush.bf16.msra.mxu0 %v558_v3  ;;  %v414_v12 = vor.u32 %v549_v10, %v411_v11  ;;  %v572_v15 = vld [vmem:[%s752_s1 + $0xa0] sm:$0xff]  ;;  %v583_v17 = vld [vmem:[%s754_s3 + $0x30] sm:$0xff]  ;;  %v555_v18 = vld [vmem:[%s752_s1 + $0x18] sm:$0xff] }
   0x7   :  { %267 = vmatpush.bf16.msra.mxu1 %v566_v4  ;;  %v563_v19 = vld [vmem:[%s752_s1 + $0x58] sm:$0xff]  ;;  %v554_v21 = vld [vmem:[%s752_s1 + $0x10] sm:$0xff]  ;;  %v553_v24 = vld [vmem:[%s752_s1 + $0x8] sm:$0xff] }
   0x8   :  { %281 = vmatpush.bf16.msra.mxu2 %v574_v5  ;;  %515 = vmatmul.msk.bf16.vlgmr.msra.gmra.mxu3 %vm248_vm0, %v414_v12  ;;  %v571_v20 = vld [vmem:[%s752_s1 + $0x98] sm:$0xff]  ;;  %v562_v22 = vld [vmem:[%s752_s1 + $0x50] sm:$0xff]  ;;  %v561_v25 = vld [vmem:[%s752_s1 + $0x48] sm:$0xff] }
   0x9   :  { %379 = vmatpush.bf16.msrb.mxu3 %v584_v16  ;;  %v570_v23 = vld [vmem:[%s752_s1 + $0x90] sm:$0xff]  ;;  %v569_v26 = vld [vmem:[%s752_s1 + $0x88] sm:$0xff]  ;;  %v552_v27 = vld [vmem:[%s752_s1] sm:$0xff] }
   0xa   :  { %254 = vmatpush.bf16.msra.mxu0 %v557_v6  ;;  %v560_v28 = vld [vmem:[%s752_s1 + $0x40] sm:$0xff]  ;;  %v550_v30 = vld [vmem:[%s753_s0 + $0xc] sm:$0xf0]  ;;  %v403_v32 = vld [vmem:[%s753_s0 + $0x10] sm:$0xf0] }
   0xb   :  { %268 = vmatpush.bf16.msra.mxu1 %v565_v7  ;;  %v401_v29 = vld [vmem:[%s753_s0] sm:$0xf]  ;;  %v548_v31 = vld [vmem:[%s753_s0 + $0x4] sm:$0xf]  ;;  %v409_v34 = vld [vmem:[%s753_s0 + $0x8] sm:$0xf] }
   0xc   :  { %282 = vmatpush.bf16.msra.mxu2 %v573_v9  ;;  %v568_v33 = vld [vmem:[%s752_s1 + $0x80] sm:$0xff]  ;;  %v551_v35 = vld [vmem:[%s753_s0 + $0x14] sm:$0xf0]  ;;  %v402_v36 = vor.u32 %v550_v30, %v401_v29  ;;  %v406_v37 = vor.u32 %v548_v31, %v403_v32  ;;  %v582_v39 = vld [vmem:[%s754_s3 + $0x28] sm:$0xff] }
   0xd   :  { %380 = vmatpush.bf16.msrb.mxu3 %v583_v17  ;;  %v410_v38 = vor.u32 %v551_v35, %v409_v34  ;;  %v581_v40 = vld [vmem:[%s754_s3 + $0x20] sm:$0xff]  ;;  %v580_v41 = vld [vmem:[%s754_s3 + $0x18] sm:$0xff]  ;;  %v579_v42 = vld [vmem:[%s754_s3 + $0x10] sm:$0xff] }
   0xe   :  { %255 = vmatpush.bf16.msra.mxu0 %v556_v13  ;;  %v578_v43 = vld [vmem:[%s754_s3 + $0x8] sm:$0xff]  ;;  %v577_v44 = vld [vmem:[%s754_s3] sm:$0xff] }
   0xf   :  { %269 = vmatpush.bf16.msra.mxu1 %v564_v14  ;;  %v585_v45 = vld [vmem:[%s755_s2] ss:$0 sm:$0xff] }
  0x10   :  { %283 = vmatpush.bf16.msra.mxu2 %v572_v15  ;;  %v586_v1 = vld [vmem:[%s756_s4] ss:$0 sm:$0xff] }
  0x11   :  { %381 = vmatpush.bf16.msrb.mxu3 %v582_v39 }
  0x12   :  { %256 = vmatpush.bf16.msra.mxu0 %v555_v18 }
  0x13   :  { %270 = vmatpush.bf16.msra.mxu1 %v563_v19 }
  0x14   :  { %284 = vmatpush.bf16.msra.mxu2 %v571_v20 }
  0x15   :  { %382 = vmatpush.bf16.msrb.mxu3 %v581_v40 }
  0x16   :  { %257 = vmatpush.bf16.msra.mxu0 %v554_v21 }
  0x17   :  { %271 = vmatpush.bf16.msra.mxu1 %v562_v22 }
  0x18   :  { %285 = vmatpush.bf16.msra.mxu2 %v570_v23 }
  0x19   :  { %383 = vmatpush.bf16.msrb.mxu3 %v580_v41 }
  0x1a   :  { %258 = vmatpush.bf16.msra.mxu0 %v553_v24 }
  0x1b   :  { %272 = vmatpush.bf16.msra.mxu1 %v561_v25 }
  0x1c   :  { %286 = vmatpush.bf16.msra.mxu2 %v569_v26 }
  0x1d   :  { %384 = vmatpush.bf16.msrb.mxu3 %v579_v42 }
  0x1e   :  { %259 = vmatpush.bf16.msra.mxu0 %v552_v27 }
  0x1f   :  { %273 = vmatpush.bf16.msra.mxu1 %v560_v28 }
  0x20   :  { %287 = vmatpush.bf16.msra.mxu2 %v568_v33 }
  0x21   :  { %260 = vmatmul.bf16.vlgmr.msra.gmra.mxu0 %v402_v36  ;;  %385 = vmatpush.bf16.msrb.mxu3 %v578_v43 }
  0x22   :  { %274 = vmatmul.bf16.vlgmr.msra.gmra.mxu1 %v406_v37 }
  0x23   :  { %288 = vmatmul.bf16.vlgmr.msra.gmra.mxu2 %v410_v38 }
  0x25   :  { %386 = vmatpush.bf16.msrb.mxu3 %v577_v44 }
  0x8b   :  { %v303_v49 = vpop.f32.mrf.mxu3 }
  0x93   :  { %v305_v60 = vpop.f32.mrf.mxu3 }
  0x9e   :  { %v261_v46 = vpop.f32.mrf.mxu0 }
  0x9f   :  { %v275_v47 = vpop.f32.mrf.mxu1  ;;  %v262_v48 = vadd.f32 %v585_v45, %v261_v46 }
  0xa1   :  { %v276_v51 = vadd.f32 %v275_v47, %v262_v48 }
  0xa6   :  { %v289_v50 = vpop.f32.mrf.mxu2  ;;  %v263_v52 = vpop.f32.mrf.mxu0 }
  0xa7   :  { %v264_v53 = vadd.f32 %v585_v45, %v263_v52  ;;  %v290_v54 = vadd.f32 %v289_v50, %v276_v51  ;;  %v277_v55 = vpop.f32.mrf.mxu1 }
  0xa9   :  { %v278_v56 = vadd.f32 %v277_v55, %v264_v53  ;;  %v304_v58 = vadd.f32 %v303_v49, %v290_v54 }
  0xab   :  { %v308_v62 = vmax.f32 %v304_v58, 0.0 }
  0xae   :  { %v291_v57 = vpop.f32.mrf.mxu2 }
  0xaf   :  { %v292_v59 = vadd.f32 %v291_v57, %v278_v56 }
  0xb1   :  { %v306_v61 = vadd.f32 %v305_v60, %v292_v59 }
  0xb3   :  { %v309_v63 = vmax.f32 %v306_v61, 0.0 }
  0xb5   :  { %v310_v0 = vpack.c.bf16 %v309_v63, %v308_v62 }
  0xb7   :  { %387 = vmatmul.bf16.vlgmr.msrb.gmra.mxu3 %v310_v0 }
 0x13a   :  { %v388_v2 = vpop.f32.mrf.mxu3 }
 0x13b   :  { %v389_v3 = vadd.f32 %v586_v1, %v388_v2 }
 0x13d   :  { %393 = vst [vmem:[%s757_s5] sm:$0xff] %v389_v3 }
 0x142   :  { %v390_v4 = vpop.f32.mrf.mxu3 }
 0x143   :  { %v391_v5 = vadd.f32 %v586_v1, %v390_v4 }
 0x145   :  { %394 = vst [vmem:[%s757_s5 + $0x8] sm:$0xff] %v391_v5 }

</bundles_post_ra>
